<compile_context>
chip_gen: v6e
topology: v6e:2x2x1
jax: 0.10.0
libtpu: 0.0.40
codegen_flags: <defaults>
</compile_context>

<pallas_src>
import math
import numpy as np
import jax
import jax.numpy as jnp
from jax import lax
from jax.experimental import pallas as pl
from jax.experimental.pallas import tpu as pltpu


# ------------------------------ batch tiling -------------------------------- #
def _pick_batch_tile(n, max_tile=128):
    """Largest multiple-of-8 tile dividing n (capped), preferring grid length >= 2
    so both v7x TensorCores get work.  Falls back to the whole batch for small /
    odd n (the block then equals the full array dim, which is always legal)."""
    divisors = [b for b in range(8, min(n, max_tile) + 1, 8) if n % b == 0]
    if not divisors:
        return n
    two_plus = [b for b in divisors if n // b >= 2]
    return max(two_plus) if two_plus else max(divisors)


# --------------------------- fused Pallas kernel ---------------------------- #
def _build_kernel(C, H, W, c1, c2, k1, s1, k2, s2, hidden, B):
    """All sizes are static Python ints; the kernel body is fully unrolled."""
    H1 = (H - k1) // s1 + 1
    W1 = (W - k1) // s1 + 1
    H2 = (H1 - k2) // s2 + 1
    W2 = (W1 - k2) // s2 + 1
    WC = W * C
    K1 = k1 * WC          # conv1 banded contraction dim
    K2 = k2 * W1 * c1     # conv2 banded contraction dim
    F = H2 * W2 * c2      # flattened feature dim

    def kernel(x_ref, w1_ref, b1_ref, w2_ref, b2_ref, wfc_ref, bfc_ref, o_ref):
        # x_ref: [H, B, W*C]  -- x_ref[h] is one aligned [B, W*C] slab.

        # ---- conv1 + ReLU: one banded matmul, rows (oh, b), lanes (kh, w, cin) --
        slabs = []
        for kh in range(k1):
            rows = [x_ref[oh * s1 + kh] for oh in range(H1)]          # [B, WC] each
            slabs.append(jnp.concatenate(rows, axis=0))               # [H1*B, WC]
        lhs1 = jnp.concatenate(slabs, axis=1).astype(jnp.bfloat16)    # [H1*B, K1]
        h1 = jnp.dot(lhs1, w1_ref[...], preferred_element_type=jnp.float32)
        h1 = jnp.maximum(h1 + b1_ref[...], 0.0)                       # [H1*B, W1*c1]

        # ---- conv2 + ReLU: one banded matmul, rows (oh2, b), lanes (kh2, w1, c1)
        slabs2 = []
        for kh2 in range(k2):
            rows = [h1[(oh2 * s2 + kh2) * B:(oh2 * s2 + kh2 + 1) * B, :]
                    for oh2 in range(H2)]                             # [B, W1*c1] each
            slabs2.append(jnp.concatenate(rows, axis=0))              # [H2*B, W1*c1]
        lhs2 = jnp.concatenate(slabs2, axis=1).astype(jnp.bfloat16)   # [H2*B, K2]
        h2 = jnp.dot(lhs2, w2_ref[...], preferred_element_type=jnp.float32)
        h2 = jnp.maximum(h2 + b2_ref[...], 0.0)                       # [H2*B, W2*c2]

        # ---- flatten (oh2 row-blocks -> lanes) + fc + ReLU ----------------------
        feat = jnp.concatenate([h2[oh2 * B:(oh2 + 1) * B, :] for oh2 in range(H2)],
                               axis=1).astype(jnp.bfloat16)           # [B, F]
        out = jnp.dot(feat, wfc_ref[...], preferred_element_type=jnp.float32)
        o_ref[...] = jnp.maximum(out + bfc_ref[...], 0.0)             # [B, hidden]

    return kernel, (H1, W1, H2, W2, WC, K1, K2, F)


def small_impala_cnn_forward(x_nchw, p):
    """Single fused pallas_call; all intermediates stay in VMEM / vregs."""
    N, C, H, W = x_nchw.shape
    k1, s1 = p["kernel1"], p["stride1"]
    k2, s2 = p["kernel2"], p["stride2"]
    c1, c2, hidden = p["c1"], p["c2"], p["hidden_dim"]

    B = _pick_batch_tile(N)
    kernel, (H1, W1, H2, W2, WC, K1, K2, F) = _build_kernel(
        C, H, W, c1, c2, k1, s1, k2, s2, hidden, B)

    # Single layout repack outside the kernel: NCHW -> [H, N, W*C], so one image
    # row across a batch tile is one aligned [B, W*C] slab (batch = sublanes).
    x3d = jnp.transpose(x_nchw, (2, 0, 3, 1)).reshape(H, N, WC)

    out = pl.pallas_call(
        kernel,
        out_shape=jax.ShapeDtypeStruct((N, hidden), jnp.float32),
        grid=(N // B,),
        in_specs=[
            pl.BlockSpec((H, B, WC), lambda g: (0, g, 0)),        # one batch tile
            pl.BlockSpec((K1, W1 * c1), lambda g: (0, 0)),        # banded conv1 weight (bf16)
            pl.BlockSpec((1, W1 * c1), lambda g: (0, 0)),         # conv1 bias row
            pl.BlockSpec((K2, W2 * c2), lambda g: (0, 0)),        # banded conv2 weight (bf16)
            pl.BlockSpec((1, W2 * c2), lambda g: (0, 0)),         # conv2 bias row
            pl.BlockSpec((F, hidden), lambda g: (0, 0)),          # fc weight, (oh2,ow2,c2)-ordered (bf16)
            pl.BlockSpec((1, hidden), lambda g: (0, 0)),          # fc bias
        ],
        out_specs=pl.BlockSpec((B, hidden), lambda g: (g, 0)),    # sublane/lane-dense writeback
        compiler_params=pltpu.CompilerParams(
            dimension_semantics=("parallel",),                    # grid >= 2 -> both v7x TCs
            vmem_limit_bytes=32 * 1024 * 1024),
    )(x3d, p["w1band"], p["b1row"], p["w2band"], p["b2row"], p["wfct"], p["bfcrow"])
    return out


# --------------------------- parameter construction ------------------------- #
def xavier_uniform(key, shape, fan_in, fan_out, gain):
    bound = gain * math.sqrt(6.0 / (fan_in + fan_out))
    return jax.random.uniform(key, shape, jnp.float32, minval=-bound, maxval=bound)


def make_params(key, in_channels, h, w, channel_scale=1, hidden_dim=256):
    gain = math.sqrt(2.0)                      # nn.init.calculate_gain('relu')
    kernel1 = 8 if h > 9 else 4
    kernel2 = 4 if w > 9 else 2
    stride1 = 4 if h > 9 else 2
    stride2 = 2 if w > 9 else 1
    c1 = 16 * channel_scale
    c2 = 32 * channel_scale
    C = in_channels

    k_1, k_2, k_3 = jax.random.split(key, 3)
    w1 = xavier_uniform(k_1, (c1, C, kernel1, kernel1),
                        C * kernel1 * kernel1, c1 * kernel1 * kernel1, gain)
    b1 = jnp.zeros((c1,), jnp.float32)
    w2 = xavier_uniform(k_2, (c2, c1, kernel2, kernel2),
                        c1 * kernel2 * kernel2, c2 * kernel2 * kernel2, gain)
    b2 = jnp.zeros((c2,), jnp.float32)

    H1 = (h - kernel1) // stride1 + 1
    W1 = (w - kernel1) // stride1 + 1
    H2 = (H1 - kernel2) // stride2 + 1
    W2 = (W1 - kernel2) // stride2 + 1
    in_features = c2 * H2 * W2
    wfc = xavier_uniform(k_3, (hidden_dim, in_features), in_features, hidden_dim, gain)
    bfc = jnp.zeros((hidden_dim,), jnp.float32)

    # ---- kernel operands, precomputed ONCE -----------------------------------
    # conv1 banded weight: rows j = kh*(W*C) + w*C + cin, cols = ow*c1 + cout
    w1_np = np.asarray(w1, np.float32)
    band1 = np.zeros((kernel1 * w * C, W1 * c1), np.float32)
    for kh in range(kernel1):
        for ow in range(W1):
            for kw in range(kernel1):
                w_in = ow * stride1 + kw
                band1[kh * w * C + w_in * C: kh * w * C + (w_in + 1) * C,
                      ow * c1:(ow + 1) * c1] = w1_np[:, :, kh, kw].T   # [cin, cout]

    # conv2 banded weight: rows j = kh2*(W1*c1) + w1pos*c1 + c1in, cols = ow2*c2 + cout
    w2_np = np.asarray(w2, np.float32)
    band2 = np.zeros((kernel2 * W1 * c1, W2 * c2), np.float32)
    for kh2 in range(kernel2):
        for ow2 in range(W2):
            for kw2 in range(kernel2):
                w1pos = ow2 * stride2 + kw2
                band2[kh2 * W1 * c1 + w1pos * c1: kh2 * W1 * c1 + (w1pos + 1) * c1,
                      ow2 * c2:(ow2 + 1) * c2] = w2_np[:, :, kh2, kw2].T

    # fc weight transposed + column-permuted: NCHW flatten (c2, oh2, ow2) -> (oh2, ow2, c2)
    wfc_np = np.asarray(wfc, np.float32)
    wfct = np.transpose(wfc_np.reshape(hidden_dim, c2, H2, W2),
                        (2, 3, 1, 0)).reshape(H2 * W2 * c2, hidden_dim)

    return dict(
        # original (PyTorch-layout) params -- used by the pure-JAX reference
        w1=w1, b1=b1, w2=w2, b2=b2, wfc=wfc, bfc=bfc,
        # prepared Pallas operands (bf16 MXU weights, f32 bias rows)
        w1band=jnp.asarray(band1, jnp.bfloat16),
        w2band=jnp.asarray(band2, jnp.bfloat16),
        wfct=jnp.asarray(wfct, jnp.bfloat16),
        b1row=jnp.asarray(np.tile(np.asarray(b1), W1)[None, :], jnp.float32),
        b2row=jnp.asarray(np.tile(np.asarray(b2), W2)[None, :], jnp.float32),
        bfcrow=jnp.asarray(bfc)[None, :],
        kernel1=kernel1, stride1=stride1, kernel2=kernel2, stride2=stride2,
        c1=c1, c2=c2, hidden_dim=hidden_dim, in_features=in_features)


# ----------------------------- pure-JAX reference --------------------------- #
def reference_forward(x_nchw, p):
    def conv(x, w, b, s):
        y = lax.conv_general_dilated(x, w, (s, s), "VALID",
                                     dimension_numbers=("NCHW", "OIHW", "NCHW"))
        return jnp.maximum(y + b[None, :, None, None], 0.0)
    x = conv(x_nchw, p["w1"], p["b1"], p["stride1"])
    x = conv(x, p["w2"], p["b2"], p["stride2"])
    x = x.reshape(x.shape[0], -1)
    return jnp.maximum(x @ p["wfc"].T + p["bfc"], 0.0)


if __name__ == "__main__":
    key = jax.random.PRNGKey(0)
    k_x, k_p = jax.random.split(key)

    # vis_obs_space.shape = (C, H, W) = (4, 32, 32) -> kernel1=8/stride1=4, kernel2=4/stride2=2.
    # N=16 gives a batch tile of 8 and a grid of length 2 (both v7x TensorCores busy).
    N, C, H, W = 16, 4, 32, 32
    x = jax.random.normal(k_x, (N, C, H, W), jnp.float32)
    params = make_params(k_p, C, H, W, channel_scale=1, hidden_dim=256)

    out = jax.block_until_ready(small_impala_cnn_forward(x, params))
    assert out.shape == (N, params["hidden_dim"]), out.shape

    ref = jax.block_until_ready(reference_forward(x, params))
    # Tolerance relaxed vs the pure-f32 reference because the MXU matmuls use
    # bf16 operands (with f32 accumulation), per the performance review.
    np.testing.assert_allclose(np.asarray(out), np.asarray(ref), atol=5e-2, rtol=5e-2)

    print("KERNEL_OK")
</pallas_src>

<mosaic_0001>
module attributes {stable_mosaic.version = 11 : i64} {
  func.func @kernel(%arg0: i32, %arg1: memref<32x8x128xf32, #tpu.memory_space<vmem>>, %arg2: memref<1024x112xbf16, #tpu.memory_space<vmem>>, %arg3: memref<1x112xf32, #tpu.memory_space<vmem>>, %arg4: memref<448x64xbf16, #tpu.memory_space<vmem>>, %arg5: memref<1x64xf32, #tpu.memory_space<vmem>>, %arg6: memref<128x256xbf16, #tpu.memory_space<vmem>>, %arg7: memref<1x256xf32, #tpu.memory_space<vmem>>, %arg8: memref<8x256xf32, #tpu.memory_space<vmem>>) attributes {dimension_semantics = [#tpu.dimension_semantics<parallel>], iteration_bounds = array<i64: 2>, scalar_prefetch = 0 : i64, scratch_operands = 0 : i64, tpu.core_type = #tpu.core_type<tc>, window_params = [{transform_indices = @transform_0, window_bounds = array<i64: 32, 8, 128>}, {pipeline_mode = #tpu.pipeline_mode<synchronous>, transform_indices = @transform_1, window_bounds = array<i64: 1024, 112>}, {pipeline_mode = #tpu.pipeline_mode<synchronous>, transform_indices = @transform_2, window_bounds = array<i64: 1, 112>}, {pipeline_mode = #tpu.pipeline_mode<synchronous>, transform_indices = @transform_3, window_bounds = array<i64: 448, 64>}, {pipeline_mode = #tpu.pipeline_mode<synchronous>, transform_indices = @transform_4, window_bounds = array<i64: 1, 64>}, {pipeline_mode = #tpu.pipeline_mode<synchronous>, transform_indices = @transform_5, window_bounds = array<i64: 128, 256>}, {pipeline_mode = #tpu.pipeline_mode<synchronous>, transform_indices = @transform_6, window_bounds = array<i64: 1, 256>}, {transform_indices = @transform_7, window_bounds = array<i64: 8, 256>}]} {
    %c0 = arith.constant 0 : index
    %c0_0 = arith.constant 0 : index
    %c0_1 = arith.constant 0 : index
    %0 = vector.load %arg1[%c0, %c0_0, %c0_1] : memref<32x8x128xf32, #tpu.memory_space<vmem>>, vector<1x8x128xf32>
    %1 = vector.shape_cast %0 : vector<1x8x128xf32> to vector<8x128xf32>
    %c4 = arith.constant 4 : index
    %c0_2 = arith.constant 0 : index
    %c0_3 = arith.constant 0 : index
    %2 = vector.load %arg1[%c4, %c0_2, %c0_3] : memref<32x8x128xf32, #tpu.memory_space<vmem>>, vector<1x8x128xf32>
    %3 = vector.shape_cast %2 : vector<1x8x128xf32> to vector<8x128xf32>
    %c8 = arith.constant 8 : index
    %c0_4 = arith.constant 0 : index
    %c0_5 = arith.constant 0 : index
    %4 = vector.load %arg1[%c8, %c0_4, %c0_5] : memref<32x8x128xf32, #tpu.memory_space<vmem>>, vector<1x8x128xf32>
    %5 = vector.shape_cast %4 : vector<1x8x128xf32> to vector<8x128xf32>
    %c12 = arith.constant 12 : index
    %c0_6 = arith.constant 0 : index
    %c0_7 = arith.constant 0 : index
    %6 = vector.load %arg1[%c12, %c0_6, %c0_7] : memref<32x8x128xf32, #tpu.memory_space<vmem>>, vector<1x8x128xf32>
    %7 = vector.shape_cast %6 : vector<1x8x128xf32> to vector<8x128xf32>
    %c16 = arith.constant 16 : index
    %c0_8 = arith.constant 0 : index
    %c0_9 = arith.constant 0 : index
    %8 = vector.load %arg1[%c16, %c0_8, %c0_9] : memref<32x8x128xf32, #tpu.memory_space<vmem>>, vector<1x8x128xf32>
    %9 = vector.shape_cast %8 : vector<1x8x128xf32> to vector<8x128xf32>
    %c20 = arith.constant 20 : index
    %c0_10 = arith.constant 0 : index
    %c0_11 = arith.constant 0 : index
    %10 = vector.load %arg1[%c20, %c0_10, %c0_11] : memref<32x8x128xf32, #tpu.memory_space<vmem>>, vector<1x8x128xf32>
    %11 = vector.shape_cast %10 : vector<1x8x128xf32> to vector<8x128xf32>
    %c24 = arith.constant 24 : index
    %c0_12 = arith.constant 0 : index
    %c0_13 = arith.constant 0 : index
    %12 = vector.load %arg1[%c24, %c0_12, %c0_13] : memref<32x8x128xf32, #tpu.memory_space<vmem>>, vector<1x8x128xf32>
    %13 = vector.shape_cast %12 : vector<1x8x128xf32> to vector<8x128xf32>
    %14 = tpu.concatenate %1, %3, %5, %7, %9, %11, %13 in 0 : vector<8x128xf32>, vector<8x128xf32>, vector<8x128xf32>, vector<8x128xf32>, vector<8x128xf32>, vector<8x128xf32>, vector<8x128xf32> -> vector<56x128xf32>
    %c1 = arith.constant 1 : index
    %c0_14 = arith.constant 0 : index
    %c0_15 = arith.constant 0 : index
    %15 = vector.load %arg1[%c1, %c0_14, %c0_15] : memref<32x8x128xf32, #tpu.memory_space<vmem>>, vector<1x8x128xf32>
    %16 = vector.shape_cast %15 : vector<1x8x128xf32> to vector<8x128xf32>
    %c5 = arith.constant 5 : index
    %c0_16 = arith.constant 0 : index
    %c0_17 = arith.constant 0 : index
    %17 = vector.load %arg1[%c5, %c0_16, %c0_17] : memref<32x8x128xf32, #tpu.memory_space<vmem>>, vector<1x8x128xf32>
    %18 = vector.shape_cast %17 : vector<1x8x128xf32> to vector<8x128xf32>
    %c9 = arith.constant 9 : index
    %c0_18 = arith.constant 0 : index
    %c0_19 = arith.constant 0 : index
    %19 = vector.load %arg1[%c9, %c0_18, %c0_19] : memref<32x8x128xf32, #tpu.memory_space<vmem>>, vector<1x8x128xf32>
    %20 = vector.shape_cast %19 : vector<1x8x128xf32> to vector<8x128xf32>
    %c13 = arith.constant 13 : index
    %c0_20 = arith.constant 0 : index
    %c0_21 = arith.constant 0 : index
    %21 = vector.load %arg1[%c13, %c0_20, %c0_21] : memref<32x8x128xf32, #tpu.memory_space<vmem>>, vector<1x8x128xf32>
    %22 = vector.shape_cast %21 : vector<1x8x128xf32> to vector<8x128xf32>
    %c17 = arith.constant 17 : index
    %c0_22 = arith.constant 0 : index
    %c0_23 = arith.constant 0 : index
    %23 = vector.load %arg1[%c17, %c0_22, %c0_23] : memref<32x8x128xf32, #tpu.memory_space<vmem>>, vector<1x8x128xf32>
    %24 = vector.shape_cast %23 : vector<1x8x128xf32> to vector<8x128xf32>
    %c21 = arith.constant 21 : index
    %c0_24 = arith.constant 0 : index
    %c0_25 = arith.constant 0 : index
    %25 = vector.load %arg1[%c21, %c0_24, %c0_25] : memref<32x8x128xf32, #tpu.memory_space<vmem>>, vector<1x8x128xf32>
    %26 = vector.shape_cast %25 : vector<1x8x128xf32> to vector<8x128xf32>
    %c25 = arith.constant 25 : index
    %c0_26 = arith.constant 0 : index
    %c0_27 = arith.constant 0 : index
    %27 = vector.load %arg1[%c25, %c0_26, %c0_27] : memref<32x8x128xf32, #tpu.memory_space<vmem>>, vector<1x8x128xf32>
    %28 = vector.shape_cast %27 : vector<1x8x128xf32> to vector<8x128xf32>
    %29 = tpu.concatenate %16, %18, %20, %22, %24, %26, %28 in 0 : vector<8x128xf32>, vector<8x128xf32>, vector<8x128xf32>, vector<8x128xf32>, vector<8x128xf32>, vector<8x128xf32>, vector<8x128xf32> -> vector<56x128xf32>
    %c2 = arith.constant 2 : index
    %c0_28 = arith.constant 0 : index
    %c0_29 = arith.constant 0 : index
    %30 = vector.load %arg1[%c2, %c0_28, %c0_29] : memref<32x8x128xf32, #tpu.memory_space<vmem>>, vector<1x8x128xf32>
    %31 = vector.shape_cast %30 : vector<1x8x128xf32> to vector<8x128xf32>
    %c6 = arith.constant 6 : index
    %c0_30 = arith.constant 0 : index
    %c0_31 = arith.constant 0 : index
    %32 = vector.load %arg1[%c6, %c0_30, %c0_31] : memref<32x8x128xf32, #tpu.memory_space<vmem>>, vector<1x8x128xf32>
    %33 = vector.shape_cast %32 : vector<1x8x128xf32> to vector<8x128xf32>
    %c10 = arith.constant 10 : index
    %c0_32 = arith.constant 0 : index
    %c0_33 = arith.constant 0 : index
    %34 = vector.load %arg1[%c10, %c0_32, %c0_33] : memref<32x8x128xf32, #tpu.memory_space<vmem>>, vector<1x8x128xf32>
    %35 = vector.shape_cast %34 : vector<1x8x128xf32> to vector<8x128xf32>
    %c14 = arith.constant 14 : index
    %c0_34 = arith.constant 0 : index
    %c0_35 = arith.constant 0 : index
    %36 = vector.load %arg1[%c14, %c0_34, %c0_35] : memref<32x8x128xf32, #tpu.memory_space<vmem>>, vector<1x8x128xf32>
    %37 = vector.shape_cast %36 : vector<1x8x128xf32> to vector<8x128xf32>
    %c18 = arith.constant 18 : index
    %c0_36 = arith.constant 0 : index
    %c0_37 = arith.constant 0 : index
    %38 = vector.load %arg1[%c18, %c0_36, %c0_37] : memref<32x8x128xf32, #tpu.memory_space<vmem>>, vector<1x8x128xf32>
    %39 = vector.shape_cast %38 : vector<1x8x128xf32> to vector<8x128xf32>
    %c22 = arith.constant 22 : index
    %c0_38 = arith.constant 0 : index
    %c0_39 = arith.constant 0 : index
    %40 = vector.load %arg1[%c22, %c0_38, %c0_39] : memref<32x8x128xf32, #tpu.memory_space<vmem>>, vector<1x8x128xf32>
    %41 = vector.shape_cast %40 : vector<1x8x128xf32> to vector<8x128xf32>
    %c26 = arith.constant 26 : index
    %c0_40 = arith.constant 0 : index
    %c0_41 = arith.constant 0 : index
    %42 = vector.load %arg1[%c26, %c0_40, %c0_41] : memref<32x8x128xf32, #tpu.memory_space<vmem>>, vector<1x8x128xf32>
    %43 = vector.shape_cast %42 : vector<1x8x128xf32> to vector<8x128xf32>
    %44 = tpu.concatenate %31, %33, %35, %37, %39, %41, %43 in 0 : vector<8x128xf32>, vector<8x128xf32>, vector<8x128xf32>, vector<8x128xf32>, vector<8x128xf32>, vector<8x128xf32>, vector<8x128xf32> -> vector<56x128xf32>
    %c3 = arith.constant 3 : index
    %c0_42 = arith.constant 0 : index
    %c0_43 = arith.constant 0 : index
    %45 = vector.load %arg1[%c3, %c0_42, %c0_43] : memref<32x8x128xf32, #tpu.memory_space<vmem>>, vector<1x8x128xf32>
    %46 = vector.shape_cast %45 : vector<1x8x128xf32> to vector<8x128xf32>
    %c7 = arith.constant 7 : index
    %c0_44 = arith.constant 0 : index
    %c0_45 = arith.constant 0 : index
    %47 = vector.load %arg1[%c7, %c0_44, %c0_45] : memref<32x8x128xf32, #tpu.memory_space<vmem>>, vector<1x8x128xf32>
    %48 = vector.shape_cast %47 : vector<1x8x128xf32> to vector<8x128xf32>
    %c11 = arith.constant 11 : index
    %c0_46 = arith.constant 0 : index
    %c0_47 = arith.constant 0 : index
    %49 = vector.load %arg1[%c11, %c0_46, %c0_47] : memref<32x8x128xf32, #tpu.memory_space<vmem>>, vector<1x8x128xf32>
    %50 = vector.shape_cast %49 : vector<1x8x128xf32> to vector<8x128xf32>
    %c15 = arith.constant 15 : index
    %c0_48 = arith.constant 0 : index
    %c0_49 = arith.constant 0 : index
    %51 = vector.load %arg1[%c15, %c0_48, %c0_49] : memref<32x8x128xf32, #tpu.memory_space<vmem>>, vector<1x8x128xf32>
    %52 = vector.shape_cast %51 : vector<1x8x128xf32> to vector<8x128xf32>
    %c19 = arith.constant 19 : index
    %c0_50 = arith.constant 0 : index
    %c0_51 = arith.constant 0 : index
    %53 = vector.load %arg1[%c19, %c0_50, %c0_51] : memref<32x8x128xf32, #tpu.memory_space<vmem>>, vector<1x8x128xf32>
    %54 = vector.shape_cast %53 : vector<1x8x128xf32> to vector<8x128xf32>
    %c23 = arith.constant 23 : index
    %c0_52 = arith.constant 0 : index
    %c0_53 = arith.constant 0 : index
    %55 = vector.load %arg1[%c23, %c0_52, %c0_53] : memref<32x8x128xf32, #tpu.memory_space<vmem>>, vector<1x8x128xf32>
    %56 = vector.shape_cast %55 : vector<1x8x128xf32> to vector<8x128xf32>
    %c27 = arith.constant 27 : index
    %c0_54 = arith.constant 0 : index
    %c0_55 = arith.constant 0 : index
    %57 = vector.load %arg1[%c27, %c0_54, %c0_55] : memref<32x8x128xf32, #tpu.memory_space<vmem>>, vector<1x8x128xf32>
    %58 = vector.shape_cast %57 : vector<1x8x128xf32> to vector<8x128xf32>
    %59 = tpu.concatenate %46, %48, %50, %52, %54, %56, %58 in 0 : vector<8x128xf32>, vector<8x128xf32>, vector<8x128xf32>, vector<8x128xf32>, vector<8x128xf32>, vector<8x128xf32>, vector<8x128xf32> -> vector<56x128xf32>
    %c4_56 = arith.constant 4 : index
    %c0_57 = arith.constant 0 : index
    %c0_58 = arith.constant 0 : index
    %60 = vector.load %arg1[%c4_56, %c0_57, %c0_58] : memref<32x8x128xf32, #tpu.memory_space<vmem>>, vector<1x8x128xf32>
    %61 = vector.shape_cast %60 : vector<1x8x128xf32> to vector<8x128xf32>
    %c8_59 = arith.constant 8 : index
    %c0_60 = arith.constant 0 : index
    %c0_61 = arith.constant 0 : index
    %62 = vector.load %arg1[%c8_59, %c0_60, %c0_61] : memref<32x8x128xf32, #tpu.memory_space<vmem>>, vector<1x8x128xf32>
    %63 = vector.shape_cast %62 : vector<1x8x128xf32> to vector<8x128xf32>
    %c12_62 = arith.constant 12 : index
    %c0_63 = arith.constant 0 : index
    %c0_64 = arith.constant 0 : index
    %64 = vector.load %arg1[%c12_62, %c0_63, %c0_64] : memref<32x8x128xf32, #tpu.memory_space<vmem>>, vector<1x8x128xf32>
    %65 = vector.shape_cast %64 : vector<1x8x128xf32> to vector<8x128xf32>
    %c16_65 = arith.constant 16 : index
    %c0_66 = arith.constant 0 : index
    %c0_67 = arith.constant 0 : index
    %66 = vector.load %arg1[%c16_65, %c0_66, %c0_67] : memref<32x8x128xf32, #tpu.memory_space<vmem>>, vector<1x8x128xf32>
    %67 = vector.shape_cast %66 : vector<1x8x128xf32> to vector<8x128xf32>
    %c20_68 = arith.constant 20 : index
    %c0_69 = arith.constant 0 : index
    %c0_70 = arith.constant 0 : index
    %68 = vector.load %arg1[%c20_68, %c0_69, %c0_70] : memref<32x8x128xf32, #tpu.memory_space<vmem>>, vector<1x8x128xf32>
    %69 = vector.shape_cast %68 : vector<1x8x128xf32> to vector<8x128xf32>
    %c24_71 = arith.constant 24 : index
    %c0_72 = arith.constant 0 : index
    %c0_73 = arith.constant 0 : index
    %70 = vector.load %arg1[%c24_71, %c0_72, %c0_73] : memref<32x8x128xf32, #tpu.memory_space<vmem>>, vector<1x8x128xf32>
    %71 = vector.shape_cast %70 : vector<1x8x128xf32> to vector<8x128xf32>
    %c28 = arith.constant 28 : index
    %c0_74 = arith.constant 0 : index
    %c0_75 = arith.constant 0 : index
    %72 = vector.load %arg1[%c28, %c0_74, %c0_75] : memref<32x8x128xf32, #tpu.memory_space<vmem>>, vector<1x8x128xf32>
    %73 = vector.shape_cast %72 : vector<1x8x128xf32> to vector<8x128xf32>
    %74 = tpu.concatenate %61, %63, %65, %67, %69, %71, %73 in 0 : vector<8x128xf32>, vector<8x128xf32>, vector<8x128xf32>, vector<8x128xf32>, vector<8x128xf32>, vector<8x128xf32>, vector<8x128xf32> -> vector<56x128xf32>
    %c5_76 = arith.constant 5 : index
    %c0_77 = arith.constant 0 : index
    %c0_78 = arith.constant 0 : index
    %75 = vector.load %arg1[%c5_76, %c0_77, %c0_78] : memref<32x8x128xf32, #tpu.memory_space<vmem>>, vector<1x8x128xf32>
    %76 = vector.shape_cast %75 : vector<1x8x128xf32> to vector<8x128xf32>
    %c9_79 = arith.constant 9 : index
    %c0_80 = arith.constant 0 : index
    %c0_81 = arith.constant 0 : index
    %77 = vector.load %arg1[%c9_79, %c0_80, %c0_81] : memref<32x8x128xf32, #tpu.memory_space<vmem>>, vector<1x8x128xf32>
    %78 = vector.shape_cast %77 : vector<1x8x128xf32> to vector<8x128xf32>
    %c13_82 = arith.constant 13 : index
    %c0_83 = arith.constant 0 : index
    %c0_84 = arith.constant 0 : index
    %79 = vector.load %arg1[%c13_82, %c0_83, %c0_84] : memref<32x8x128xf32, #tpu.memory_space<vmem>>, vector<1x8x128xf32>
    %80 = vector.shape_cast %79 : vector<1x8x128xf32> to vector<8x128xf32>
    %c17_85 = arith.constant 17 : index
    %c0_86 = arith.constant 0 : index
    %c0_87 = arith.constant 0 : index
    %81 = vector.load %arg1[%c17_85, %c0_86, %c0_87] : memref<32x8x128xf32, #tpu.memory_space<vmem>>, vector<1x8x128xf32>
    %82 = vector.shape_cast %81 : vector<1x8x128xf32> to vector<8x128xf32>
    %c21_88 = arith.constant 21 : index
    %c0_89 = arith.constant 0 : index
    %c0_90 = arith.constant 0 : index
    %83 = vector.load %arg1[%c21_88, %c0_89, %c0_90] : memref<32x8x128xf32, #tpu.memory_space<vmem>>, vector<1x8x128xf32>
    %84 = vector.shape_cast %83 : vector<1x8x128xf32> to vector<8x128xf32>
    %c25_91 = arith.constant 25 : index
    %c0_92 = arith.constant 0 : index
    %c0_93 = arith.constant 0 : index
    %85 = vector.load %arg1[%c25_91, %c0_92, %c0_93] : memref<32x8x128xf32, #tpu.memory_space<vmem>>, vector<1x8x128xf32>
    %86 = vector.shape_cast %85 : vector<1x8x128xf32> to vector<8x128xf32>
    %c29 = arith.constant 29 : index
    %c0_94 = arith.constant 0 : index
    %c0_95 = arith.constant 0 : index
    %87 = vector.load %arg1[%c29, %c0_94, %c0_95] : memref<32x8x128xf32, #tpu.memory_space<vmem>>, vector<1x8x128xf32>
    %88 = vector.shape_cast %87 : vector<1x8x128xf32> to vector<8x128xf32>
    %89 = tpu.concatenate %76, %78, %80, %82, %84, %86, %88 in 0 : vector<8x128xf32>, vector<8x128xf32>, vector<8x128xf32>, vector<8x128xf32>, vector<8x128xf32>, vector<8x128xf32>, vector<8x128xf32> -> vector<56x128xf32>
    %c6_96 = arith.constant 6 : index
    %c0_97 = arith.constant 0 : index
    %c0_98 = arith.constant 0 : index
    %90 = vector.load %arg1[%c6_96, %c0_97, %c0_98] : memref<32x8x128xf32, #tpu.memory_space<vmem>>, vector<1x8x128xf32>
    %91 = vector.shape_cast %90 : vector<1x8x128xf32> to vector<8x128xf32>
    %c10_99 = arith.constant 10 : index
    %c0_100 = arith.constant 0 : index
    %c0_101 = arith.constant 0 : index
    %92 = vector.load %arg1[%c10_99, %c0_100, %c0_101] : memref<32x8x128xf32, #tpu.memory_space<vmem>>, vector<1x8x128xf32>
    %93 = vector.shape_cast %92 : vector<1x8x128xf32> to vector<8x128xf32>
    %c14_102 = arith.constant 14 : index
    %c0_103 = arith.constant 0 : index
    %c0_104 = arith.constant 0 : index
    %94 = vector.load %arg1[%c14_102, %c0_103, %c0_104] : memref<32x8x128xf32, #tpu.memory_space<vmem>>, vector<1x8x128xf32>
    %95 = vector.shape_cast %94 : vector<1x8x128xf32> to vector<8x128xf32>
    %c18_105 = arith.constant 18 : index
    %c0_106 = arith.constant 0 : index
    %c0_107 = arith.constant 0 : index
    %96 = vector.load %arg1[%c18_105, %c0_106, %c0_107] : memref<32x8x128xf32, #tpu.memory_space<vmem>>, vector<1x8x128xf32>
    %97 = vector.shape_cast %96 : vector<1x8x128xf32> to vector<8x128xf32>
    %c22_108 = arith.constant 22 : index
    %c0_109 = arith.constant 0 : index
    %c0_110 = arith.constant 0 : index
    %98 = vector.load %arg1[%c22_108, %c0_109, %c0_110] : memref<32x8x128xf32, #tpu.memory_space<vmem>>, vector<1x8x128xf32>
    %99 = vector.shape_cast %98 : vector<1x8x128xf32> to vector<8x128xf32>
    %c26_111 = arith.constant 26 : index
    %c0_112 = arith.constant 0 : index
    %c0_113 = arith.constant 0 : index
    %100 = vector.load %arg1[%c26_111, %c0_112, %c0_113] : memref<32x8x128xf32, #tpu.memory_space<vmem>>, vector<1x8x128xf32>
    %101 = vector.shape_cast %100 : vector<1x8x128xf32> to vector<8x128xf32>
    %c30 = arith.constant 30 : index
    %c0_114 = arith.constant 0 : index
    %c0_115 = arith.constant 0 : index
    %102 = vector.load %arg1[%c30, %c0_114, %c0_115] : memref<32x8x128xf32, #tpu.memory_space<vmem>>, vector<1x8x128xf32>
    %103 = vector.shape_cast %102 : vector<1x8x128xf32> to vector<8x128xf32>
    %104 = tpu.concatenate %91, %93, %95, %97, %99, %101, %103 in 0 : vector<8x128xf32>, vector<8x128xf32>, vector<8x128xf32>, vector<8x128xf32>, vector<8x128xf32>, vector<8x128xf32>, vector<8x128xf32> -> vector<56x128xf32>
    %c7_116 = arith.constant 7 : index
    %c0_117 = arith.constant 0 : index
    %c0_118 = arith.constant 0 : index
    %105 = vector.load %arg1[%c7_116, %c0_117, %c0_118] : memref<32x8x128xf32, #tpu.memory_space<vmem>>, vector<1x8x128xf32>
    %106 = vector.shape_cast %105 : vector<1x8x128xf32> to vector<8x128xf32>
    %c11_119 = arith.constant 11 : index
    %c0_120 = arith.constant 0 : index
    %c0_121 = arith.constant 0 : index
    %107 = vector.load %arg1[%c11_119, %c0_120, %c0_121] : memref<32x8x128xf32, #tpu.memory_space<vmem>>, vector<1x8x128xf32>
    %108 = vector.shape_cast %107 : vector<1x8x128xf32> to vector<8x128xf32>
    %c15_122 = arith.constant 15 : index
    %c0_123 = arith.constant 0 : index
    %c0_124 = arith.constant 0 : index
    %109 = vector.load %arg1[%c15_122, %c0_123, %c0_124] : memref<32x8x128xf32, #tpu.memory_space<vmem>>, vector<1x8x128xf32>
    %110 = vector.shape_cast %109 : vector<1x8x128xf32> to vector<8x128xf32>
    %c19_125 = arith.constant 19 : index
    %c0_126 = arith.constant 0 : index
    %c0_127 = arith.constant 0 : index
    %111 = vector.load %arg1[%c19_125, %c0_126, %c0_127] : memref<32x8x128xf32, #tpu.memory_space<vmem>>, vector<1x8x128xf32>
    %112 = vector.shape_cast %111 : vector<1x8x128xf32> to vector<8x128xf32>
    %c23_128 = arith.constant 23 : index
    %c0_129 = arith.constant 0 : index
    %c0_130 = arith.constant 0 : index
    %113 = vector.load %arg1[%c23_128, %c0_129, %c0_130] : memref<32x8x128xf32, #tpu.memory_space<vmem>>, vector<1x8x128xf32>
    %114 = vector.shape_cast %113 : vector<1x8x128xf32> to vector<8x128xf32>
    %c27_131 = arith.constant 27 : index
    %c0_132 = arith.constant 0 : index
    %c0_133 = arith.constant 0 : index
    %115 = vector.load %arg1[%c27_131, %c0_132, %c0_133] : memref<32x8x128xf32, #tpu.memory_space<vmem>>, vector<1x8x128xf32>
    %116 = vector.shape_cast %115 : vector<1x8x128xf32> to vector<8x128xf32>
    %c31 = arith.constant 31 : index
    %c0_134 = arith.constant 0 : index
    %c0_135 = arith.constant 0 : index
    %117 = vector.load %arg1[%c31, %c0_134, %c0_135] : memref<32x8x128xf32, #tpu.memory_space<vmem>>, vector<1x8x128xf32>
    %118 = vector.shape_cast %117 : vector<1x8x128xf32> to vector<8x128xf32>
    %119 = tpu.concatenate %106, %108, %110, %112, %114, %116, %118 in 0 : vector<8x128xf32>, vector<8x128xf32>, vector<8x128xf32>, vector<8x128xf32>, vector<8x128xf32>, vector<8x128xf32>, vector<8x128xf32> -> vector<56x128xf32>
    %120 = tpu.concatenate %14, %29, %44, %59, %74, %89, %104, %119 in 1 : vector<56x128xf32>, vector<56x128xf32>, vector<56x128xf32>, vector<56x128xf32>, vector<56x128xf32>, vector<56x128xf32>, vector<56x128xf32>, vector<56x128xf32> -> vector<56x1024xf32>
    %121 = arith.truncf %120 : vector<56x1024xf32> to vector<56x1024xbf16>
    %c0_136 = arith.constant 0 : index
    %c0_137 = arith.constant 0 : index
    %122 = vector.load %arg2[%c0_136, %c0_137] : memref<1024x112xbf16, #tpu.memory_space<vmem>>, vector<1024x112xbf16>
    %cst = arith.constant dense<0.000000e+00> : vector<56x112xf32>
    %123 = tpu.matmul %121, %122, %cst {dimension_numbers = #tpu.dot_dimension_numbers<[1], [0], [0], [1], [0, 0, 1, 1], [], []>} : vector<56x1024xbf16>, vector<1024x112xbf16>, vector<56x112xf32> -> vector<56x112xf32>
    %c0_138 = arith.constant 0 : index
    %c0_139 = arith.constant 0 : index
    %124 = vector.load %arg3[%c0_138, %c0_139] : memref<1x112xf32, #tpu.memory_space<vmem>>, vector<1x112xf32>
    %125 = vector.broadcast %124 : vector<1x112xf32> to vector<56x112xf32>
    %126 = arith.addf %123, %125 : vector<56x112xf32>
    %cst_140 = arith.constant 0.000000e+00 : f32
    %127 = vector.broadcast %cst_140 : f32 to vector<56x112xf32>
    %128 = arith.maximumf %126, %127 : vector<56x112xf32>
    %129 = vector.extract_strided_slice %128 {offsets = [0, 0], sizes = [8, 112], strides = [1, 1]} : vector<56x112xf32> to vector<8x112xf32>
    %130 = vector.extract_strided_slice %128 {offsets = [16, 0], sizes = [8, 112], strides = [1, 1]} : vector<56x112xf32> to vector<8x112xf32>
    %131 = tpu.concatenate %129, %130 in 0 : vector<8x112xf32>, vector<8x112xf32> -> vector<16x112xf32>
    %132 = vector.extract_strided_slice %128 {offsets = [8, 0], sizes = [8, 112], strides = [1, 1]} : vector<56x112xf32> to vector<8x112xf32>
    %133 = vector.extract_strided_slice %128 {offsets = [24, 0], sizes = [8, 112], strides = [1, 1]} : vector<56x112xf32> to vector<8x112xf32>
    %134 = tpu.concatenate %132, %133 in 0 : vector<8x112xf32>, vector<8x112xf32> -> vector<16x112xf32>
    %135 = vector.extract_strided_slice %128 {offsets = [16, 0], sizes = [8, 112], strides = [1, 1]} : vector<56x112xf32> to vector<8x112xf32>
    %136 = vector.extract_strided_slice %128 {offsets = [32, 0], sizes = [8, 112], strides = [1, 1]} : vector<56x112xf32> to vector<8x112xf32>
    %137 = tpu.concatenate %135, %136 in 0 : vector<8x112xf32>, vector<8x112xf32> -> vector<16x112xf32>
    %138 = vector.extract_strided_slice %128 {offsets = [24, 0], sizes = [8, 112], strides = [1, 1]} : vector<56x112xf32> to vector<8x112xf32>
    %139 = vector.extract_strided_slice %128 {offsets = [40, 0], sizes = [8, 112], strides = [1, 1]} : vector<56x112xf32> to vector<8x112xf32>
    %140 = tpu.concatenate %138, %139 in 0 : vector<8x112xf32>, vector<8x112xf32> -> vector<16x112xf32>
    %141 = tpu.concatenate %131, %134, %137, %140 in 1 : vector<16x112xf32>, vector<16x112xf32>, vector<16x112xf32>, vector<16x112xf32> -> vector<16x448xf32>
    %142 = arith.truncf %141 : vector<16x448xf32> to vector<16x448xbf16>
    %c0_141 = arith.constant 0 : index
    %c0_142 = arith.constant 0 : index
    %143 = vector.load %arg4[%c0_141, %c0_142] : memref<448x64xbf16, #tpu.memory_space<vmem>>, vector<448x64xbf16>
    %cst_143 = arith.constant dense<0.000000e+00> : vector<16x64xf32>
    %144 = tpu.matmul %142, %143, %cst_143 {dimension_numbers = #tpu.dot_dimension_numbers<[1], [0], [0], [1], [0, 0, 1, 1], [], []>} : vector<16x448xbf16>, vector<448x64xbf16>, vector<16x64xf32> -> vector<16x64xf32>
    %c0_144 = arith.constant 0 : index
    %c0_145 = arith.constant 0 : index
    %145 = vector.load %arg5[%c0_144, %c0_145] : memref<1x64xf32, #tpu.memory_space<vmem>>, vector<1x64xf32>
    %146 = vector.broadcast %145 : vector<1x64xf32> to vector<16x64xf32>
    %147 = arith.addf %144, %146 : vector<16x64xf32>
    %cst_146 = arith.constant 0.000000e+00 : f32
    %148 = vector.broadcast %cst_146 : f32 to vector<16x64xf32>
    %149 = arith.maximumf %147, %148 : vector<16x64xf32>
    %150 = vector.extract_strided_slice %149 {offsets = [0, 0], sizes = [8, 64], strides = [1, 1]} : vector<16x64xf32> to vector<8x64xf32>
    %151 = vector.extract_strided_slice %149 {offsets = [8, 0], sizes = [8, 64], strides = [1, 1]} : vector<16x64xf32> to vector<8x64xf32>
    %152 = tpu.concatenate %150, %151 in 1 : vector<8x64xf32>, vector<8x64xf32> -> vector<8x128xf32>
    %153 = arith.truncf %152 : vector<8x128xf32> to vector<8x128xbf16>
    %c0_147 = arith.constant 0 : index
    %c0_148 = arith.constant 0 : index
    %154 = vector.load %arg6[%c0_147, %c0_148] : memref<128x256xbf16, #tpu.memory_space<vmem>>, vector<128x256xbf16>
    %cst_149 = arith.constant dense<0.000000e+00> : vector<8x256xf32>
    %155 = tpu.matmul %153, %154, %cst_149 {dimension_numbers = #tpu.dot_dimension_numbers<[1], [0], [0], [1], [0, 0, 1, 1], [], []>} : vector<8x128xbf16>, vector<128x256xbf16>, vector<8x256xf32> -> vector<8x256xf32>
    %c0_150 = arith.constant 0 : index
    %c0_151 = arith.constant 0 : index
    %156 = vector.load %arg7[%c0_150, %c0_151] : memref<1x256xf32, #tpu.memory_space<vmem>>, vector<1x256xf32>
    %157 = vector.broadcast %156 : vector<1x256xf32> to vector<8x256xf32>
    %158 = arith.addf %155, %157 : vector<8x256xf32>
    %cst_152 = arith.constant 0.000000e+00 : f32
    %159 = vector.broadcast %cst_152 : f32 to vector<8x256xf32>
    %160 = arith.maximumf %158, %159 : vector<8x256xf32>
    %c0_153 = arith.constant 0 : index
    %c0_154 = arith.constant 0 : index
    %161 = vector.load %arg8[%c0_153, %c0_154] : memref<8x256xf32, #tpu.memory_space<vmem>>, vector<8x256xf32>
    tpu.vector_store %arg8[%c0_153, %c0_154], %160 {strides = array<i32>} : memref<8x256xf32, #tpu.memory_space<vmem>>, vector<8x256xf32>,
    return
  }
  func.func @transform_0(%arg0: i32) -> (i32, i32, i32) {
    %c0_i32 = arith.constant 0 : i32
    %c0_i32_0 = arith.constant 0 : i32
    %c0_i32_1 = arith.constant 0 : i32
    return %c0_i32, %arg0, %c0_i32_0 : i32, i32, i32
  }
  func.func @transform_1(%arg0: i32) -> (i32, i32) {
    %c0_i32 = arith.constant 0 : i32
    %c0_i32_0 = arith.constant 0 : i32
    %c0_i32_1 = arith.constant 0 : i32
    return %c0_i32, %c0_i32_0 : i32, i32
  }
  func.func @transform_2(%arg0: i32) -> (i32, i32) {
    %c0_i32 = arith.constant 0 : i32
    %c0_i32_0 = arith.constant 0 : i32
    %c0_i32_1 = arith.constant 0 : i32
    return %c0_i32, %c0_i32_0 : i32, i32
  }
  func.func @transform_3(%arg0: i32) -> (i32, i32) {
    %c0_i32 = arith.constant 0 : i32
    %c0_i32_0 = arith.constant 0 : i32
    %c0_i32_1 = arith.constant 0 : i32
    return %c0_i32, %c0_i32_0 : i32, i32
  }
  func.func @transform_4(%arg0: i32) -> (i32, i32) {
    %c0_i32 = arith.constant 0 : i32
    %c0_i32_0 = arith.constant 0 : i32
    %c0_i32_1 = arith.constant 0 : i32
    return %c0_i32, %c0_i32_0 : i32, i32
  }
  func.func @transform_5(%arg0: i32) -> (i32, i32) {
    %c0_i32 = arith.constant 0 : i32
    %c0_i32_0 = arith.constant 0 : i32
    %c0_i32_1 = arith.constant 0 : i32
    return %c0_i32, %c0_i32_0 : i32, i32
  }
  func.func @transform_6(%arg0: i32) -> (i32, i32) {
    %c0_i32 = arith.constant 0 : i32
    %c0_i32_0 = arith.constant 0 : i32
    %c0_i32_1 = arith.constant 0 : i32
    return %c0_i32, %c0_i32_0 : i32, i32
  }
  func.func @transform_7(%arg0: i32) -> (i32, i32) {
    %c0_i32 = arith.constant 0 : i32
    %c0_i32_0 = arith.constant 0 : i32
    return %arg0, %c0_i32 : i32, i32
  }
}

</mosaic_0001>

<bundles_post_ra>
// kernel: tpu_custom_call.1
= control target key start
LH: loop header
LB: loop body
LE: loop exit
PB: predicated region body
PF: predicated region fallthrough
CT: control target
= control target key end

     0   :  { %12 = vsyncpa [#allocation4], 0  ;;  %s3180_s0 = inlined_call_operand.vmem [shape: f32[32,16,128], index: 0, kind: input, shape index: {}]   ;;  %s3181_s1 = inlined_call_operand.vmem [shape: bf16[1024,112], index: 1, kind: input, shape index: {}]   ;;  %s3182_s2 = inlined_call_operand.vmem [shape: f32[1,112], index: 2, kind: input, shape index: {}]   ;;  %s3183_s3 = inlined_call_operand.vmem [shape: bf16[448,64], index: 3, kind: input, shape index: {}]   ;;  %s3184_s4 = inlined_call_operand.vmem [shape: f32[1,64], index: 4, kind: input, shape index: {}]   ;;  %s3185_s5 = inlined_call_operand.vmem [shape: bf16[128,256], index: 5, kind: input, shape index: {}]   ;;  %s3186_s6 = inlined_call_operand.vmem [shape: f32[1,256], index: 6, kind: input, shape index: {}]   ;;  %s3187_s7 = inlined_call_operand.hbm [shape: f32[16,256], index: 7, kind: output, shape index: {}]  }
   0x1   :  { %14 = vsyncpa [#allocation4 + $0x1], 0  ;;  %s2524_s24 = smov 0   ;;  %s2526_s25 = smov 0  }
   0x2   :  { %s2528_s26 = smov 0   ;;  %s2530_s27 = smov 0  }
   0x3 LB: > { %s1902_s28 = sadd.s32 4294967295, %s2476_s27   ;;  %s1903_s29 = sadd.s32 4294967294, %s2476_s27   ;;  %s2476_s27 = sphi %s2530_s27, %s3193_s27   ;;  %s2472_s26 = sphi %s2528_s26, %s3192_s26   ;;  %s2468_s25 = sphi %s2526_s25, %s3191_s25   ;;  %s2464_s24 = sphi %s2524_s24, %s3190_s24  }
   0x4   : > { %s2547_s30 = sadd.s32 1, %s2476_s27   ;;  %s27_s8 = sadd.s32 1, %s2472_s26 }
   0x5   : > { %s24_s9 = ssub.s32 %s2476_s27, %s2547_s30  ;;  %p34_p0 = scmp.ne.s32.totalorder %s2472_s26, %s2468_s25 }
   0x6   : > { %p25_p1 = scmp.eq.s32.totalorder %s24_s9, 0  ;;  %p35_p2 = scmp.eq.s32.totalorder %s2476_s27, 0 }
   0x7   : > { %p190_p3 = scmp.eq.s32.totalorder %s1902_s28, 1  ;;  %p195_p4 = scmp.ne.s32.totalorder %s2468_s25, %s2464_s24 }
   0x8   : > { %s2560_s10 = scalar_select %p25_p1, %s2472_s26, %s27_s8  }
   0x9   : > { %p36_p5 = por %p35_p2, %p34_p0  ;;  %p2562_p6 = por %p190_p3, %p34_p0 }
   0xa   : > { %p196_p7 = scmp.eq.s32.totalorder %s1903_s29, 1  ;;  %p1905_p9 = scmp.ge.s32.totalorder %s2476_s27, 2 }
   0xc   : > { %p2566_p8 = por %p196_p7, %p195_p4  ;;  %230 = sbr.rel (%p1905_p9) target bundleno = 37 (0x25), region = 40 }
  0x11   : > { %233 = sbr.rel (!%p36_p5) target bundleno = 37 (0x25), region = 44  ;;  %s235_s13 = sand.u32 (%p36_p5), 1, %s2472_s26  }
  0x12   : > { %s1907_s14 = sshll.u32 (%p36_p5), %s2476_s27, 3  ;;  %s1906_s15 = sshll.u32 (%p36_p5), %s235_s13, 8 }
  0x13   : > { %s2578_s18 = scalar_lea.vmem (%p36_p5), %s3180_s0, %s1907_s14  ;;  %s2583_s19 = scalar_lea.vmem (%p36_p5), [#allocation2], %s1906_s15 }
  0x14   : > { %v330_v0 = vld [vmem:[%s2578_s18] sm:$0xff] (%p36_p5)  ;;  %v332_v1 = vld [vmem:[%s2578_s18 + $0x10] sm:$0xff] (%p36_p5) }
  0x15   : > { %v334_v2 = vld [vmem:[%s2578_s18 + $0x20] sm:$0xff] (%p36_p5)  ;;  %331 = vst [vmem:[%s2583_s19] sm:$0xff] (%p36_p5), %v330_v0  ;;  %333 = vst [vmem:[%s2583_s19 + $0x8] sm:$0xff] (%p36_p5), %v332_v1  ;;  %v336_v3 = vld [vmem:[%s2578_s18 + $0x30] sm:$0xff] (%p36_p5) }
  0x16   : > { %335 = vst [vmem:[%s2583_s19 + $0x10] sm:$0xff] %v334_v2  ;;  %v338_v4 = vld [vmem:[%s2578_s18 + $0x40] sm:$0xff]  ;;  %v340_v5 = vld [vmem:[%s2578_s18 + $0x50] sm:$0xff]  ;;  %337 = vst [vmem:[%s2583_s19 + $0x18] sm:$0xff] %v336_v3 }
  0x17   : > { %339 = vst [vmem:[%s2583_s19 + $0x20] sm:$0xff] %v338_v4  ;;  %341 = vst [vmem:[%s2583_s19 + $0x28] sm:$0xff] %v340_v5  ;;  %v342_v6 = vld [vmem:[%s2578_s18 + $0x60] sm:$0xff]  ;;  %v344_v7 = vld [vmem:[%s2578_s18 + $0x70] sm:$0xff] }
  0x18   : > { %v346_v8 = vld [vmem:[%s2578_s18 + $0x80] sm:$0xff]  ;;  %343 = vst [vmem:[%s2583_s19 + $0x30] sm:$0xff] %v342_v6  ;;  %345 = vst [vmem:[%s2583_s19 + $0x38] sm:$0xff] %v344_v7  ;;  %v348_v9 = vld [vmem:[%s2578_s18 + $0x90] sm:$0xff] }
  0x19   : > { %347 = vst [vmem:[%s2583_s19 + $0x40] sm:$0xff] %v346_v8  ;;  %v350_v10 = vld [vmem:[%s2578_s18 + $0xa0] sm:$0xff]  ;;  %v352_v11 = vld [vmem:[%s2578_s18 + $0xb0] sm:$0xff]  ;;  %349 = vst [vmem:[%s2583_s19 + $0x48] sm:$0xff] %v348_v9 }
  0x1a   : > { %351 = vst [vmem:[%s2583_s19 + $0x50] sm:$0xff] %v350_v10  ;;  %353 = vst [vmem:[%s2583_s19 + $0x58] sm:$0xff] %v352_v11  ;;  %v354_v12 = vld [vmem:[%s2578_s18 + $0xc0] sm:$0xff]  ;;  %v356_v13 = vld [vmem:[%s2578_s18 + $0xd0] sm:$0xff] }
  0x1b   : > { %v358_v14 = vld [vmem:[%s2578_s18 + $0xe0] sm:$0xff]  ;;  %355 = vst [vmem:[%s2583_s19 + $0x60] sm:$0xff] %v354_v12  ;;  %357 = vst [vmem:[%s2583_s19 + $0x68] sm:$0xff] %v356_v13  ;;  %v360_v15 = vld [vmem:[%s2578_s18 + $0xf0] sm:$0xff] }
  0x1c   : > { %359 = vst [vmem:[%s2583_s19 + $0x70] sm:$0xff] %v358_v14  ;;  %v362_v16 = vld [vmem:[%s2578_s18 + $0x100] sm:$0xff]  ;;  %v364_v17 = vld [vmem:[%s2578_s18 + $0x110] sm:$0xff]  ;;  %361 = vst [vmem:[%s2583_s19 + $0x78] sm:$0xff] %v360_v15 }
  0x1d   : > { %363 = vst [vmem:[%s2583_s19 + $0x80] sm:$0xff] %v362_v16  ;;  %365 = vst [vmem:[%s2583_s19 + $0x88] sm:$0xff] %v364_v17  ;;  %v366_v18 = vld [vmem:[%s2578_s18 + $0x120] sm:$0xff]  ;;  %v368_v19 = vld [vmem:[%s2578_s18 + $0x130] sm:$0xff] }
  0x1e   : > { %v370_v20 = vld [vmem:[%s2578_s18 + $0x140] sm:$0xff]  ;;  %367 = vst [vmem:[%s2583_s19 + $0x90] sm:$0xff] %v366_v18  ;;  %369 = vst [vmem:[%s2583_s19 + $0x98] sm:$0xff] %v368_v19  ;;  %v372_v21 = vld [vmem:[%s2578_s18 + $0x150] sm:$0xff] }
  0x1f   : > { %371 = vst [vmem:[%s2583_s19 + $0xa0] sm:$0xff] %v370_v20  ;;  %v374_v22 = vld [vmem:[%s2578_s18 + $0x160] sm:$0xff]  ;;  %v376_v23 = vld [vmem:[%s2578_s18 + $0x170] sm:$0xff]  ;;  %373 = vst [vmem:[%s2583_s19 + $0xa8] sm:$0xff] %v372_v21 }
  0x20   : > { %375 = vst [vmem:[%s2583_s19 + $0xb0] sm:$0xff] %v374_v22  ;;  %377 = vst [vmem:[%s2583_s19 + $0xb8] sm:$0xff] %v376_v23  ;;  %v378_v24 = vld [vmem:[%s2578_s18 + $0x180] sm:$0xff]  ;;  %v380_v25 = vld [vmem:[%s2578_s18 + $0x190] sm:$0xff] }
  0x21   : > { %v382_v26 = vld [vmem:[%s2578_s18 + $0x1a0] sm:$0xff]  ;;  %379 = vst [vmem:[%s2583_s19 + $0xc0] sm:$0xff] %v378_v24  ;;  %381 = vst [vmem:[%s2583_s19 + $0xc8] sm:$0xff] %v380_v25  ;;  %v384_v27 = vld [vmem:[%s2578_s18 + $0x1b0] sm:$0xff] }
  0x22   : > { %383 = vst [vmem:[%s2583_s19 + $0xd0] sm:$0xff] %v382_v26  ;;  %v386_v28 = vld [vmem:[%s2578_s18 + $0x1c0] sm:$0xff]  ;;  %v388_v29 = vld [vmem:[%s2578_s18 + $0x1d0] sm:$0xff]  ;;  %385 = vst [vmem:[%s2583_s19 + $0xd8] sm:$0xff] %v384_v27 }
  0x23   : > { %387 = vst [vmem:[%s2583_s19 + $0xe0] sm:$0xff] %v386_v28  ;;  %389 = vst [vmem:[%s2583_s19 + $0xe8] sm:$0xff] %v388_v29  ;;  %v390_v30 = vld [vmem:[%s2578_s18 + $0x1e0] sm:$0xff]  ;;  %v392_v31 = vld [vmem:[%s2578_s18 + $0x1f0] sm:$0xff] }
  0x24   : > { %391 = vst [vmem:[%s2583_s19 + $0xf0] sm:$0xff] %v390_v30  ;;  %393 = vst [vmem:[%s2583_s19 + $0xf8] sm:$0xff] %v392_v31 }
  0x25 PF: > { %p1908_p10 = scmp.ge.s32.totalorder %s2476_s27, 1  ;;  %p398_p11 = scmp.lt.s32.totalorder %s2476_s27, 3 }
  0x27   : > { %p399_p12 = pnand %p1908_p10, %p398_p11 }
  0x28   : > { %s2721_s9 = sand.u32 (!%p399_p12), 1, %s2468_s25   ;;  %s2480_s20 = smov (!%p399_p12), 96  }
  0x29   : > { %402 = sbr.rel (%p399_p12) target bundleno = 991 (0x3df), region = 82  ;;  %s1909_s19 = sshll.u32 (!%p399_p12), %s2721_s9, 8 }
  0x2a   : > { %s2748_s17 = scalar_lea.vmem (!%p399_p12), [#allocation2], %s1909_s19  ;;  %s2479_s19 = smov (!%p399_p12), 112  }
  0x2b   : > { %s2481_s21 = smov (!%p399_p12), 80   ;;  %s2482_s16 = smov (!%p399_p12), 64  }
  0x2c   : > { %s1824_s13 = scalar_lea.sflag (!%p399_p12), [#allocation4], %s2721_s9 }
  0x2e   : > { %v2300_v32 = vld [vmem:[%s3181_s1 + $0x78] sm:$0xff]   ;;  %v2304_v36 = vld [vmem:[%s3181_s1 + $0x70] sm:$0xff]   ;;  %v2308_v40 = vld [vmem:[%s3181_s1 + $0x68] sm:$0xff]   ;;  %vm1332_vm0 = vcmask 916480   ;;  %vm1335_vm1 = vcmask 785408   ;;  %vm1338_vm2 = vcmask 654336  }
  0x2f   : > { %v2301_v33 = vld [vmem:[%s3181_s1 + $0xf8] sm:$0xff]   ;;  %2059 = vmatprep.subr.bf16.mxu0 %v2300_v32  ;;  %v2305_v37 = vld [vmem:[%s3181_s1 + $0xf0] sm:$0xff]   ;;  %v2309_v41 = vld [vmem:[%s3181_s1 + $0xe8] sm:$0xff]   ;;  %vm1576_vm3 = vcmask 523264  }
  0x30   : > { %v2302_v34 = vld [vmem:[%s3181_s1 + $0x38] sm:$0xff]   ;;  %2099 = vmatprep.subr.bf16.mxu1 %v2301_v33  ;;  %v2306_v38 = vld [vmem:[%s3181_s1 + $0x30] sm:$0xff]   ;;  %v2310_v42 = vld [vmem:[%s3181_s1 + $0x28] sm:$0xff]  }
  0x31   : > { %v2303_v35 = vld [vmem:[%s3181_s1 + $0xb8] sm:$0xff]   ;;  %2060 = vmatpush3.bf16.msra.mxu0 %v2302_v34  ;;  %v2307_v39 = vld [vmem:[%s3181_s1 + $0xb0] sm:$0xff]   ;;  %v2311_v43 = vld [vmem:[%s3181_s1 + $0xa8] sm:$0xff]  }
  0x32   : > { %2100 = vmatpush3.bf16.msra.mxu1 %v2303_v35  ;;  %2061 = vmatprep.subr.bf16.mxu0 %v2304_v36  ;;  %v2312_v44 = vld [vmem:[%s3181_s1 + $0x60] sm:$0xff]   ;;  %v2316_v48 = vld [vmem:[%s3181_s1 + $0x58] sm:$0xff]   ;;  %v2320_v52 = vld [vmem:[%s3181_s1 + $0x50] sm:$0xff]  }
  0x33   : > { %2101 = vmatprep.subr.bf16.mxu1 %v2305_v37  ;;  %v2313_v45 = vld [vmem:[%s3181_s1 + $0xe0] sm:$0xff]   ;;  %v2317_v49 = vld [vmem:[%s3181_s1 + $0xd8] sm:$0xff]   ;;  %v2321_v53 = vld [vmem:[%s3181_s1 + $0xd0] sm:$0xff]  }
  0x34   : > { %v2314_v46 = vld [vmem:[%s3181_s1 + $0x20] sm:$0xff]   ;;  %v2318_v50 = vld [vmem:[%s3181_s1 + $0x18] sm:$0xff]   ;;  %v2322_v54 = vld [vmem:[%s3181_s1 + $0x10] sm:$0xff]  }
  0x35   : > { %2062 = vmatpush3.bf16.msra.mxu0 %v2306_v38  ;;  %v2315_v47 = vld [vmem:[%s3181_s1 + $0xa0] sm:$0xff]   ;;  %v2319_v51 = vld [vmem:[%s3181_s1 + $0x98] sm:$0xff]   ;;  %v2323_v55 = vld [vmem:[%s3181_s1 + $0x90] sm:$0xff]  }
  0x36   : > { %2102 = vmatpush3.bf16.msra.mxu1 %v2307_v39  ;;  %2063 = vmatprep.subr.bf16.mxu0 %v2308_v40  ;;  %v2324_v56 = vld [vmem:[%s3181_s1 + $0x48] sm:$0xff]   ;;  %v2328_v60 = vld [vmem:[%s3181_s1 + $0x40] sm:$0xff]   ;;  %v1931_v3 = vld [vmem:[%s2748_s17 + $0x18] sm:$0xff] }
  0x37   : > { %2103 = vmatprep.subr.bf16.mxu1 %v2309_v41  ;;  %v2325_v57 = vld [vmem:[%s3181_s1 + $0xc8] sm:$0xff]   ;;  %v2329_v61 = vld [vmem:[%s3181_s1 + $0xc0] sm:$0xff]   ;;  %v2757_v4 = vld [vmem:[%s2748_s17 + $0x38] sm:$0xff] }
  0x38   : > { %v2326_v58 = vld [vmem:[%s3181_s1 + $0x8] sm:$0xff]   ;;  %v2330_v62 = vld [vmem:[%s3181_s1] sm:$0xff]   ;;  %v503_v5 = vpack.c.bf16 %v2757_v4, %v1931_v3  ;;  %v1924_v8 = vld [vmem:[%s2748_s17 + $0x10] sm:$0xff] }
  0x39   : > { %2064 = vmatpush3.bf16.msra.mxu0 %v2310_v42  ;;  %v2327_v59 = vld [vmem:[%s3181_s1 + $0x88] sm:$0xff]   ;;  %v2331_v63 = vld [vmem:[%s3181_s1 + $0x80] sm:$0xff]   ;;  %v2767_v10 = vld [vmem:[%s2748_s17 + $0x30] sm:$0xff] }
  0x3a   : > { %2104 = vmatpush3.bf16.msra.mxu1 %v2311_v43  ;;  %2065 = vmatprep.subr.bf16.mxu0 %v2312_v44  ;;  %v1917_v0 = vld [vmem:[%s2748_s17 + $0x8] sm:$0xff]  ;;  %v437_v6 = vld [vmem:[%s2748_s17] sm:$0xff]  ;;  %v502_v11 = vpack.c.bf16 %v2767_v10, %v1924_v8  ;;  %v2332_v12 = vld [vmem:[%s3181_s1 + $0x178] sm:$0xff]  }
  0x3b   : > { %2105 = vmatprep.subr.bf16.mxu1 %v2313_v45  ;;  %v2752_v1 = vld [vmem:[%s2748_s17 + $0x28] sm:$0xff]  ;;  %v2762_v7 = vld [vmem:[%s2748_s17 + $0x20] sm:$0xff]  ;;  %1146 = vmatprep.mubr.bf16.mxu1 %v503_v5  ;;  %v2333_v13 = vld [vmem:[%s3181_s1 + $0x1f8] sm:$0xff]  }
  0x3c   : > { %v501_v2 = vpack.c.bf16 %v2752_v1, %v1917_v0  ;;  %v500_v9 = vpack.c.bf16 %v2762_v7, %v437_v6  ;;  %v2334_v14 = vld [vmem:[%s3181_s1 + $0x138] sm:$0xff]   ;;  %v2780_v15 = vld [vmem:[%s2748_s17 + $0x48] sm:$0xff]  ;;  %v2336_v18 = vld [vmem:[%s3181_s1 + $0x170] sm:$0xff]  }
  0x3d   : > { %2066 = vmatpush3.bf16.msra.mxu0 %v2314_v46  ;;  %v2783_v16 = vld [vmem:[%s2748_s17 + $0x58] sm:$0xff]  ;;  %v2337_v19 = vld [vmem:[%s3181_s1 + $0x1f0] sm:$0xff]   ;;  %v2801_v22 = vld [vmem:[%s2748_s17 + $0x68] sm:$0xff]  ;;  %v505_v5 = vpack.c.bf16 %v2780_v15, %v2752_v1 }
  0x3e   : > { %2106 = vmatpush3.bf16.msra.mxu1 %v2315_v47  ;;  %2067 = vmatprep.subr.bf16.mxu0 %v2316_v48  ;;  %v2335_v17 = vld [vmem:[%s3181_s1 + $0x1b8] sm:$0xff]   ;;  %v2338_v20 = vld [vmem:[%s3181_s1 + $0x130] sm:$0xff]   ;;  %v509_v24 = vpack.c.bf16 %v2801_v22, %v2780_v15  ;;  %v2811_v26 = vld [vmem:[%s2748_s17 + $0x40] sm:$0xff] }
  0x3f   : > { %2107 = vmatprep.subr.bf16.mxu1 %v2317_v49  ;;  %1083 = vmatprep.mubr.bf16.mxu0 %v501_v2  ;;  %v2339_v21 = vld [vmem:[%s3181_s1 + $0x1b0] sm:$0xff]   ;;  %v2804_v23 = vld [vmem:[%s2748_s17 + $0x78] sm:$0xff]  ;;  %v2814_v27 = vld [vmem:[%s2748_s17 + $0x60] sm:$0xff]  ;;  %v504_v15 = vpack.c.bf16 %v2811_v26, %v2762_v7 }
  0x40   : > { %v511_v25 = vpack.c.bf16 %v2804_v23, %v2783_v16  ;;  %v2817_v28 = vld [vmem:[%s2748_s17 + $0x50] sm:$0xff]  ;;  %v508_v29 = vpack.c.bf16 %v2814_v27, %v2811_v26  ;;  %v2340_v32 = vld [vmem:[%s3181_s1 + $0x168] sm:$0xff]   ;;  %v2344_v36 = vld [vmem:[%s3181_s1 + $0x160] sm:$0xff]  }
  0x41   : > { %2068 = vmatpush3.bf16.msra.mxu0 %v2318_v50  ;;  %v2822_v30 = vld [vmem:[%s2748_s17 + $0x70] sm:$0xff]  ;;  %v2341_v33 = vld [vmem:[%s3181_s1 + $0x1e8] sm:$0xff]   ;;  %v2345_v37 = vld [vmem:[%s3181_s1 + $0x1e0] sm:$0xff]  }
  0x42   : > { %2108 = vmatpush3.bf16.msra.mxu1 %v2319_v51  ;;  %2069 = vmatprep.subr.bf16.mxu0 %v2320_v52  ;;  %v510_v31 = vpack.c.bf16 %v2822_v30, %v2817_v28  ;;  %v2342_v34 = vld [vmem:[%s3181_s1 + $0x128] sm:$0xff]   ;;  %v2346_v38 = vld [vmem:[%s3181_s1 + $0x120] sm:$0xff]   ;;  %v2859_v43 = vld [vmem:[%s2748_s17 + $0x98] sm:$0xff] }
  0x43   : > { %2109 = vmatprep.subr.bf16.mxu1 %v2321_v53  ;;  %v2343_v35 = vld [vmem:[%s3181_s1 + $0x1a8] sm:$0xff]   ;;  %v2347_v39 = vld [vmem:[%s3181_s1 + $0x1a0] sm:$0xff]   ;;  %v2862_v44 = vld [vmem:[%s2748_s17 + $0xb8] sm:$0xff] }
  0x44   : > { %v2851_v40 = vld [vmem:[%s2748_s17 + $0x88] sm:$0xff]  ;;  %v2865_v45 = vld [vmem:[%s2748_s17 + $0x80] sm:$0xff]  ;;  %v519_v46 = vpack.c.bf16 %v2862_v44, %v2859_v43  ;;  %v2873_v48 = vld [vmem:[%s2748_s17 + $0x90] sm:$0xff] }
  0x45   : > { %2070 = vmatpush3.bf16.msra.mxu0 %v2322_v54  ;;  %v2854_v41 = vld [vmem:[%s2748_s17 + $0xa8] sm:$0xff]  ;;  %v2870_v47 = vld [vmem:[%s2748_s17 + $0xa0] sm:$0xff]  ;;  %v2876_v49 = vld [vmem:[%s2748_s17 + $0xb0] sm:$0xff]  ;;  %v512_v7 = vpack.c.bf16 %v2865_v45, %v2814_v27 }
  0x46   : > { %2110 = vmatpush3.bf16.msra.mxu1 %v2323_v55  ;;  %2071 = vmatprep.subr.bf16.mxu0 %v2324_v56  ;;  %v517_v42 = vpack.c.bf16 %v2854_v41, %v2851_v40  ;;  %v516_v50 = vpack.c.bf16 %v2870_v47, %v2865_v45  ;;  %v518_v51 = vpack.c.bf16 %v2876_v49, %v2873_v48  ;;  %v2348_v52 = vld [vmem:[%s3181_s1 + $0x158] sm:$0xff]   ;;  %v2352_v56 = vld [vmem:[%s3181_s1 + $0x150] sm:$0xff]   ;;  %v2356_v8 = vld [vmem:[%s3181_s1 + $0x148] sm:$0xff]  }
  0x47   : > { %2111 = vmatprep.subr.bf16.mxu1 %v2325_v57  ;;  %v2349_v53 = vld [vmem:[%s3181_s1 + $0x1d8] sm:$0xff]   ;;  %v2353_v57 = vld [vmem:[%s3181_s1 + $0x1d0] sm:$0xff]   ;;  %v2358_v1 = vld [vmem:[%s3181_s1 + $0x108] sm:$0xff]  }
  0x48   : > { %v2350_v54 = vld [vmem:[%s3181_s1 + $0x118] sm:$0xff]   ;;  %v1930_v3 = vld [vmem:[%s2748_s17 + $0xd0] sm:$0xff] }
  0x49   : > { %2072 = vmatpush3.bf16.msra.mxu0 %v2326_v58  ;;  %v2351_v55 = vld [vmem:[%s3181_s1 + $0x198] sm:$0xff]   ;;  %v2354_v58 = vld [vmem:[%s3181_s1 + $0x110] sm:$0xff]   ;;  %v526_v6 = vpack.c.bf16 %v1930_v3, %v1930_v3 }
  0x4a   : > { %2112 = vmatpush3.bf16.msra.mxu1 %v2327_v59  ;;  %2073 = vmatprep.subr.bf16.mxu0 %v2328_v60  ;;  %v2355_v59 = vld [vmem:[%s3181_s1 + $0x190] sm:$0xff]   ;;  %v1923_v60 = vld [vmem:[%s2748_s17 + $0xc8] sm:$0xff]  ;;  %v2367_v26 = vld [vmem:[%s3183_s3 + $0x78] sm:$0xff]  }
  0x4b   : > { %2113 = vmatprep.subr.bf16.mxu1 %v2329_v61  ;;  %v1937_v61 = vld [vmem:[%s2748_s17 + $0xd8] sm:$0xff]  ;;  %v2374_v45 = vld [vmem:[%s3183_s3 + $0x90] sm:$0xff]  }
  0x4c   : > { %v527_v0 = vpack.c.bf16 %v1937_v61, %v1937_v61  ;;  %v2369_v27 = vld [vmem:[%s3183_s3 + $0x38] sm:$0xff]  }
  0x4d   : > { %2074 = vmatpush3.bf16.msra.mxu0 %v2330_v62  ;;  %v1916_v62 = vld [vmem:[%s2748_s17 + $0xc0] sm:$0xff] }
  0x4e   : > { %2114 = vmatpush3.bf16.msra.mxu1 %v2331_v63  ;;  %2139 = vmatprep.subr.bf16.mxu0 %v2332_v12  ;;  %v525_v63 = vpack.c.bf16 %v1923_v60, %v1923_v60  ;;  %v524_v2 = vpack.c.bf16 %v1916_v62, %v1916_v62  ;;  %v2359_v12 = vld [vmem:[%s3181_s1 + $0x188] sm:$0xff]  }
  0x4f   : > { %2179 = vmatprep.subr.bf16.mxu1 %v2333_v13  ;;  %v2361_v13 = vld [vmem:[%s3181_s1 + $0x1c0] sm:$0xff]  }
  0x50   : > { %1084 = vmatmul.mubr.bf16.vlgmr.msra.gmra.mxu0 %v500_v9  ;;  %v507_v9 = vpack.c.bf16 %v2783_v16, %v2757_v4  ;;  %v2360_v4 = vld [vmem:[%s3181_s1 + $0x140] sm:$0xff]  }
  0x51   : > { %1147 = vmatmul.mubr.bf16.vlgmr.msra.gmra.mxu1 %v502_v11  ;;  %2140 = vmatpush3.bf16.msra.mxu0 %v2334_v14  ;;  %v2357_v11 = vld [vmem:[%s3181_s1 + $0x1c8] sm:$0xff]   ;;  %v2362_v14 = vld [vmem:[%s3181_s1 + $0x100] sm:$0xff]  }
  0x52   : > { %2180 = vmatpush3.bf16.msra.mxu1 %v2335_v17  ;;  %2141 = vmatprep.subr.bf16.mxu0 %v2336_v18  ;;  %v2363_v16 = vld [vmem:[%s3181_s1 + $0x180] sm:$0xff]   ;;  %v506_v17 = vpack.c.bf16 %v2817_v28, %v2767_v10  ;;  %v513_v18 = vpack.c.bf16 %v2851_v40, %v2801_v22  ;;  %v521_v10 = vpack.c.bf16 %v1923_v60, %v2854_v41  ;;  %v2365_v28 = vld [vmem:[%s3183_s3 + $0xb0] sm:$0xff]   ;;  %v2379_v41 = vld [vmem:[%s3183_s3 + $0x58] sm:$0xff]  }
  0x53   : > { %2181 = vmatprep.subr.bf16.mxu1 %v2337_v19  ;;  %1091 = vmatprep.mubr.bf16.mxu0 %v509_v24  ;;  %v515_v19 = vpack.c.bf16 %v2859_v43, %v2804_v23  ;;  %v520_v22 = vpack.c.bf16 %v1916_v62, %v2870_v47  ;;  %v522_v23 = vpack.c.bf16 %v1930_v3, %v2876_v49  ;;  %v2364_v24 = vld [vmem:[%s3183_s3 + $0xb8] sm:$0xff]   ;;  %v2378_v40 = vld [vmem:[%s3183_s3 + $0x20] sm:$0xff]   ;;  %v2377_v47 = vld [vmem:[%s3183_s3 + $0x88] sm:$0xff]  }
  0x54   : > { %1154 = vmatprep.mubr.bf16.mxu1 %v511_v25  ;;  %v2478_v25 = vmov 0   ;;  %v2381_v43 = vld [vmem:[%s3183_s3 + $0x18] sm:$0xff]  }
  0x55   : > { %2142 = vmatpush3.bf16.msra.mxu0 %v2338_v20  ;;  %v514_v20 = vpack.c.bf16 %v2873_v48, %v2822_v30  ;;  %v2372_v30 = vld [vmem:[%s3183_s3 + $0x30] sm:$0xff]   ;;  %v2380_v48 = vld [vmem:[%s3183_s3 + $0x80] sm:$0xff]   ;;  %v2383_v49 = vld [vmem:[%s3183_s3 + $0xd8] sm:$0xff]  }
  0x56   : > { %2182 = vmatpush3.bf16.msra.mxu1 %v2339_v21  ;;  %2143 = vmatprep.subr.bf16.mxu0 %v2340_v32  ;;  %v523_v21 = vpack.c.bf16 %v1937_v61, %v2862_v44  ;;  %v2366_v32 = vld [vmem:[%s3183_s3 + $0xa8] sm:$0xff]   ;;  %v2382_v44 = vld [vmem:[%s3183_s3 + $0x50] sm:$0xff]  }
  0x57   : > { %2183 = vmatprep.subr.bf16.mxu1 %v2341_v33  ;;  %v1939_v33 = vld [vmem:[%s2748_s17 + $0xe8] sm:$0xff] }
  0x58   : > { %1092 = vmatmul.mubr.bf16.gmra.mxu0 %v508_v29  ;;  %v2370_v29 = vld [vmem:[%s3183_s3 + $0x70] sm:$0xff]  }
  0x59   : > { %1155 = vmatmul.mubr.bf16.gmra.mxu1 %v510_v31  ;;  %2144 = vmatpush3.bf16.msra.mxu0 %v2342_v34  ;;  %v2373_v31 = vld [vmem:[%s3183_s3 + $0x68] sm:$0xff]   ;;  %v1938_v34 = vld [vmem:[%s2748_s17 + $0xe0] sm:$0xff] }
  0x5a   : > { %2184 = vmatpush3.bf16.msra.mxu1 %v2343_v35  ;;  %2145 = vmatprep.subr.bf16.mxu0 %v2344_v36  ;;  %v529_v35 = vpack.c.bf16 %v1939_v33, %v1939_v33  ;;  %v528_v36 = vpack.c.bf16 %v1938_v34, %v1938_v34 }
  0x5b   : > { %2185 = vmatprep.subr.bf16.mxu1 %v2345_v37  ;;  %1099 = vmatprep.mubr.bf16.mxu0 %v517_v42  ;;  %v2375_v37 = vld [vmem:[%s3183_s3 + $0x28] sm:$0xff]   ;;  %v2371_v42 = vld [vmem:[%s3183_s3 + $0x98] sm:$0xff]  }
  0x5c   : > { %1162 = vmatprep.mubr.bf16.mxu1 %v519_v46  ;;  %v2384_v46 = vld [vmem:[%s3183_s3 + $0x10] sm:$0xff]  }
  0x5d   : > { %2146 = vmatpush3.bf16.msra.mxu0 %v2346_v38  ;;  %v2376_v38 = vld [vmem:[%s3183_s3 + $0x60] sm:$0xff]  }
  0x5e   : > { %2186 = vmatpush3.bf16.msra.mxu1 %v2347_v39  ;;  %2147 = vmatprep.subr.bf16.mxu0 %v2348_v52  ;;  %v2368_v39 = vld [vmem:[%s3183_s3 + $0xa0] sm:$0xff]  }
  0x5f   : > { %2187 = vmatprep.subr.bf16.mxu1 %v2349_v53  ;;  %v3032_v52 = vld [vmem:[%s3182_s2] ss:$0 sm:$0xff] }
  0x60   : > { %1100 = vmatmul.mubr.bf16.gmra.mxu0 %v516_v50 }
  0x61   : > { %1163 = vmatmul.mubr.bf16.gmra.mxu1 %v518_v51  ;;  %2148 = vmatpush3.bf16.msra.mxu0 %v2350_v54 }
  0x62   : > { %2188 = vmatpush3.bf16.msra.mxu1 %v2351_v55  ;;  %2149 = vmatprep.subr.bf16.mxu0 %v2352_v56 }
  0x63   : > { %2189 = vmatprep.subr.bf16.mxu1 %v2353_v57  ;;  %1107 = vmatprep.mubr.bf16.mxu0 %v525_v63 }
  0x64   : > { %1170 = vmatprep.mubr.bf16.mxu1 %v527_v0 }
  0x65   : > { %2150 = vmatpush3.bf16.msra.mxu0 %v2354_v58 }
  0x66   : > { %2190 = vmatpush3.bf16.msra.mxu1 %v2355_v59  ;;  %2151 = vmatprep.subr.bf16.mxu0 %v2356_v8 }
  0x67   : > { %2191 = vmatprep.subr.bf16.mxu1 %v2357_v11 }
  0x68   : > { %1108 = vmatmul.mubr.bf16.gmra.mxu0 %v524_v2 }
  0x69   : > { %1171 = vmatmul.mubr.bf16.gmra.mxu1 %v526_v6  ;;  %2152 = vmatpush3.bf16.msra.mxu0 %v2358_v1 }
  0x6a   : > { %1209 = vmatprep.mubr.bf16.mxu0 %v505_v5  ;;  %2192 = vmatpush3.bf16.msra.mxu1 %v2359_v12 }
  0x6b   : > { %1272 = vmatprep.mubr.bf16.mxu1 %v507_v9  ;;  %2153 = vmatprep.subr.bf16.mxu0 %v2360_v4 }
  0x6c   : > { %2193 = vmatprep.subr.bf16.mxu1 %v2361_v13 }
  0x6d   : > { %2154 = vmatpush3.bf16.msra.mxu0 %v2362_v14 }
  0x6e   : > { %2194 = vmatpush3.bf16.msra.mxu1 %v2363_v16  ;;  %2219 = vmatprep.subr.bf16.mxu0 %v2367_v26 }
  0x6f   : > { %1621 = vmatprep.subr.bf16.mxu1 %v2478_v25 }
  0x70   : > { %1210 = vmatmul.mubr.bf16.vlgmr.msra.gmra.mxu0 %v504_v15 }
  0x71   : > { %1273 = vmatmul.mubr.bf16.vlgmr.msra.gmra.mxu1 %v506_v17  ;;  %1217 = vmatprep.mubr.bf16.mxu0 %v513_v18 }
  0x72   : > { %1280 = vmatprep.mubr.bf16.mxu1 %v515_v19  ;;  %1622 = vmatpush1.bf16.msra.mxu1 %v2364_v24 }
  0x73   : > { %1623 = vmatprep.subr.bf16.mxu1 %v2478_v25  ;;  %2220 = vmatpush3.bf16.msra.mxu0 %v2369_v27 }
  0x74   : > { %2221 = vmatprep.subr.bf16.mxu0 %v2370_v29 }
  0x76   : > { %1624 = vmatpush1.bf16.msra.mxu1 %v2365_v28 }
  0x77   : > { %1625 = vmatprep.subr.bf16.mxu1 %v2478_v25  ;;  %2222 = vmatpush3.bf16.msra.mxu0 %v2372_v30 }
  0x78   : > { %1218 = vmatmul.mubr.bf16.gmra.mxu0 %v512_v7  ;;  %2223 = vmatprep.subr.bf16.mxu0 %v2373_v31 }
  0x79   : > { %1281 = vmatmul.mubr.bf16.gmra.mxu1 %v514_v20  ;;  %1225 = vmatprep.mubr.bf16.mxu0 %v521_v10 }
  0x7a   : > { %1288 = vmatprep.mubr.bf16.mxu1 %v523_v21  ;;  %1626 = vmatpush1.bf16.msra.mxu1 %v2366_v32 }
  0x7b   : > { %1627 = vmatprep.subr.bf16.mxu1 %v2478_v25  ;;  %2224 = vmatpush3.bf16.msra.mxu0 %v2375_v37 }
  0x7c   : > { %2225 = vmatprep.subr.bf16.mxu0 %v2376_v38 }
  0x7e   : > { %1628 = vmatpush1.bf16.msra.mxu1 %v2368_v39 }
  0x7f   : > { %1629 = vmatprep.subr.bf16.mxu1 %v2478_v25  ;;  %2226 = vmatpush3.bf16.msra.mxu0 %v2378_v40 }
  0x80   : > { %1226 = vmatmul.mubr.bf16.gmra.mxu0 %v520_v22  ;;  %2227 = vmatprep.subr.bf16.mxu0 %v2379_v41 }
  0x81   : > { %1289 = vmatmul.mubr.bf16.gmra.mxu1 %v522_v23  ;;  %1233 = vmatprep.mubr.bf16.mxu0 %v529_v35 }
  0x82   : > { %1630 = vmatpush1.bf16.msra.mxu1 %v2371_v42 }
  0x83   : > { %1631 = vmatprep.subr.bf16.mxu1 %v2478_v25  ;;  %2228 = vmatpush3.bf16.msra.mxu0 %v2381_v43 }
  0x84   : > { %2229 = vmatprep.subr.bf16.mxu0 %v2382_v44 }
  0x86   : > { %1632 = vmatpush1.bf16.msra.mxu1 %v2374_v45 }
  0x87   : > { %1633 = vmatprep.subr.bf16.mxu1 %v2478_v25  ;;  %2230 = vmatpush3.bf16.msra.mxu0 %v2384_v46 }
  0x88   : > { %1234 = vmatmul.mubr.bf16.gmra.mxu0 %v528_v36 }
  0x8a   : > { %1634 = vmatpush1.bf16.msra.mxu1 %v2377_v47 }
  0x8b   : > { %1635 = vmatprep.subr.bf16.mxu1 %v2478_v25 }
  0x8e   : > { %1636 = vmatpush1.bf16.msra.mxu1 %v2380_v48 }
  0x8f   : > { %1645 = vmatprep.subr.bf16.mxu1 %v2478_v25 }
  0x92   : > { %1646 = vmatpush2.bf16.msra.mxu1 %v2383_v49 }
  0x93   : > { %1647 = vmatprep.subr.bf16.mxu1 %v2478_v25 }
 0x110   : > { %v2075_v50 = vpop.f32.mrf.mxu0 }
 0x111   : > { %v2115_v51 = vpop.f32.mrf.mxu1 }
 0x112   : > { %v2076_v53 = vpop.f32.mrf.mxu0 }
 0x113   : > { %v2077_v54 = vadd.f32 %v2076_v53, %v2075_v50  ;;  %v2116_v55 = vpop.f32.mrf.mxu1  ;;  %v1941_v50 = vld [vmem:[%s2748_s17 + $0xf8] sm:$0xff] }
 0x114   : > { %v2117_v56 = vadd.f32 %v2116_v55, %v2115_v51  ;;  %v2078_v57 = vpop.f32.mrf.mxu0  ;;  %v531_v55 = vpack.c.bf16 %v1941_v50, %v1941_v50 }
 0x115   : > { %v1086_v58 = vadd.f32 %v2077_v54, %v3032_v52  ;;  %v2118_v59 = vpop.f32.mrf.mxu1 }
 0x116   : > { %v2079_v60 = vpop.f32.mrf.mxu0  ;;  %1296 = vmatprep.mubr.bf16.mxu1 %v531_v55 }
 0x117   : > { %v1149_v61 = vadd.f32 %v2117_v56, %v1086_v58  ;;  %v2119_v62 = vpop.f32.mrf.mxu1  ;;  %v2080_v26 = vadd.f32 %v2079_v60, %v2078_v57  ;;  %v1940_v56 = vld [vmem:[%s2748_s17 + $0xf0] sm:$0xff]  ;;  %v2385_v60 = vld [vmem:[%s3183_s3 + $0x48] sm:$0xff]  }
 0x118   : > { %v2081_v63 = vpop.f32.mrf.mxu0  ;;  %v2120_v40 = vadd.f32 %v2119_v62, %v2118_v59  ;;  %v530_v62 = vpack.c.bf16 %v1940_v56, %v1940_v56  ;;  %2231 = vmatprep.subr.bf16.mxu0 %v2385_v60 }
 0x119   : > { %v2121_v0 = vpop.f32.mrf.mxu1  ;;  %v1089_v34 = vadd.f32 %v2080_v26, %v3032_v52 }
 0x11a   : > { %v2082_v2 = vpop.f32.mrf.mxu0  ;;  %1297 = vmatmul.mubr.bf16.gmra.mxu1 %v530_v62 }
 0x11b   : > { %v2122_v3 = vpop.f32.mrf.mxu1  ;;  %v2083_v35 = vadd.f32 %v2082_v2, %v2081_v63  ;;  %v1152_v44 = vadd.f32 %v2120_v40, %v1089_v34 }
 0x11c   : > { %v2084_v5 = vpop.f32.mrf.mxu0  ;;  %v2123_v51 = vadd.f32 %v2122_v3, %v2121_v0 }
 0x11d   : > { %v2124_v6 = vpop.f32.mrf.mxu1  ;;  %v1094_v45 = vadd.f32 %v2083_v35, %v3032_v52 }
 0x11e   : > { %v2085_v8 = vpop.f32.mrf.mxu0 }
 0x11f   : > { %v2125_v9 = vpop.f32.mrf.mxu1  ;;  %v2086_v37 = vadd.f32 %v2085_v8, %v2084_v5  ;;  %v1157_v63 = vadd.f32 %v2123_v51, %v1094_v45  ;;  %v2387_v5 = vld [vmem:[%s3183_s3 + $0x8] sm:$0xff]  }
 0x120   : > { %v2087_v11 = vpop.f32.mrf.mxu0  ;;  %v2126_v57 = vadd.f32 %v2125_v9, %v2124_v6  ;;  %2232 = vmatpush3.bf16.msra.mxu0 %v2387_v5 }
 0x121   : > { %v3035_v1 = vpop.f32.mrf.mxu1  ;;  %v1097_v48 = vadd.f32 %v2086_v37, %v3032_v52 }
 0x122   : > { %v2088_v12 = vpop.f32.mrf.mxu0 }
 0x123   : > { %v3037_v4 = vpop.f32.mrf.mxu1  ;;  %v2089_v46 = vadd.f32 %v2088_v12, %v2087_v11  ;;  %v1160_v6 = vadd.f32 %v2126_v57, %v1097_v48 }
 0x124   : > { %v2090_v13 = vpop.f32.mrf.mxu0  ;;  %v2129_v12 = vadd.f32 %v3037_v4, %v3035_v1 }
 0x125   : > { %v3039_v14 = vpop.f32.mrf.mxu1  ;;  %v1102_v2 = vadd.f32 %v2089_v46, %v3032_v52 }
 0x126   : > { %v2091_v15 = vpop.f32.mrf.mxu0 }
 0x127   : > { %v3041_v16 = vpop.f32.mrf.mxu1  ;;  %v2092_v8 = vadd.f32 %v2091_v15, %v2090_v13  ;;  %v2390_v13 = vld [vmem:[%s3183_s3] sm:$0xff]   ;;  %v1165_v4 = vadd.f32 %v2129_v12, %v1102_v2 }
 0x128   : > { %v2093_v17 = vpop.f32.mrf.mxu0 }
 0x129   : > { %v2133_v18 = vpop.f32.mrf.mxu1 }
 0x12a   : > { %v2094_v19 = vpop.f32.mrf.mxu0 }
 0x12b   : > { %v2134_v7 = vpop.f32.mrf.mxu1  ;;  %v2388_v19 = vld [vmem:[%s3183_s3 + $0x40] sm:$0xff]  }
 0x12c   : > { %v2096_v20 = vpop.f32.mrf.mxu0  ;;  %v2389_v7 = vld [vmem:[%s3183_s3 + $0xc8] sm:$0xff]   ;;  %2233 = vmatprep.subr.bf16.mxu0 %v2388_v19 }
 0x12d   : > { %v2136_v10 = vpop.f32.mrf.mxu1  ;;  %2234 = vmatpush3.bf16.msra.mxu0 %v2390_v13  ;;  %v2392_v13 = vld [vmem:[%s3185_s5 + $0x70] ss:$8 sps:$4 sm:$0xff]  }
 0x12e   : > { %v2097_v21 = vpop.f32.mrf.mxu0 }
 0x12f   : > { %v2137_v22 = vpop.f32.mrf.mxu1 }
 0x130   : > { %v2155_v23 = vpop.f32.mrf.mxu0  ;;  %v1105_v22 = vadd.f32 %v2092_v8, %v3032_v52  ;;  %v2391_v52 = vld [vmem:[%s3183_s3 + $0xc0] sm:$0xff]  }
 0x131   : > { %v2195_v24 = vpop.f32.mrf.mxu1 }
 0x132   : > { %v2156_v27 = vpop.f32.mrf.mxu0 }
 0x133   : > { %v2157_v28 = vadd.f32 %v2156_v27, %v2155_v23  ;;  %v2196_v29 = vpop.f32.mrf.mxu1 }
 0x134   : > { %v2197_v30 = vadd.f32 %v2196_v29, %v2195_v24  ;;  %v2158_v31 = vpop.f32.mrf.mxu0 }
 0x135   : > { %v1212_v32 = vadd.f32 %v2157_v28, %v1149_v61  ;;  %v2198_v33 = vpop.f32.mrf.mxu1  ;;  %v2386_v61 = vld [vmem:[%s3183_s3 + $0xd0] sm:$0xff]   ;;  %v2132_v28 = vadd.f32 %v3041_v16, %v3039_v14 }
 0x136   : > { %v2159_v36 = vpop.f32.mrf.mxu0  ;;  %1648 = vmatpush2.bf16.msra.mxu1 %v2386_v61 }
 0x137   : > { %v3044_v38 = vadd.f32 %v2197_v30, %v1212_v32  ;;  %v2199_v39 = vpop.f32.mrf.mxu1  ;;  %v2160_v41 = vadd.f32 %v2159_v36, %v2158_v31  ;;  %1649 = vmatprep.subr.bf16.mxu1 %v2478_v25  ;;  %v1168_v37 = vadd.f32 %v2132_v28, %v1105_v22  ;;  %v2406_v22 = vld [vmem:[%s3185_s5 + $0x34] ss:$8 sps:$4 sm:$0xff]   ;;  %v2410_v28 = vld [vmem:[%s3185_s5 + $0x10] ss:$8 sps:$4 sm:$0xff]  }
 0x138   : > { %v2161_v42 = vpop.f32.mrf.mxu0  ;;  %v2200_v0 = vadd.f32 %v2199_v39, %v2198_v33 }
 0x139   : > { %v2201_v43 = vpop.f32.mrf.mxu1  ;;  %v1215_v53 = vadd.f32 %v2160_v41, %v1152_v44  ;;  %v1303_v57 = vmax.f32 %v3044_v38, 0.0 }
 0x13a   : > { %v2162_v47 = vpop.f32.mrf.mxu0  ;;  %1650 = vmatpush2.bf16.msra.mxu1 %v2389_v7 }
 0x13b   : > { %v2202_v49 = vpop.f32.mrf.mxu1  ;;  %v2163_v58 = vadd.f32 %v2162_v47, %v2161_v42  ;;  %v1278_v17 = vadd.f32 %v2200_v0, %v1215_v53  ;;  %1651 = vmatprep.subr.bf16.mxu1 %v2478_v25 }
 0x13c   : > { %v2164_v54 = vpop.f32.mrf.mxu0  ;;  %v2203_v23 = vadd.f32 %v2202_v49, %v2201_v43 }
 0x13d   : > { %v2204_v59 = vpop.f32.mrf.mxu1  ;;  %v1220_v15 = vadd.f32 %v2163_v58, %v1157_v63  ;;  %v1304_v29 = vmax.f32 %v1278_v17, 0.0 }
 0x13e   : > { %v2165_v3 = vpop.f32.mrf.mxu0  ;;  %1652 = vmatpush2.bf16.msra.mxu1 %v2391_v52 }
 0x13f   : > { %v2166_v9 = vadd.f32 %v2165_v3, %v2164_v54  ;;  %v2205_v11 = vpop.f32.mrf.mxu1  ;;  %v1283_v31 = vadd.f32 %v2203_v23, %v1220_v15  ;;  %v2394_v15 = vld [vmem:[%s3185_s5 + $0x74] ss:$8 sps:$4 sm:$0xff]   ;;  %v2404_v23 = vld [vmem:[%s3185_s5 + $0x30] ss:$8 sps:$4 sm:$0xff]  }
 0x140   : > { %v2167_v18 = vpop.f32.mrf.mxu0  ;;  %v2206_v10 = vadd.f32 %v2205_v11, %v2204_v59  ;;  %1778 = vmatprep.subr.bf16.mxu0 %v2394_v15 }
 0x141   : > { %v1223_v20 = vadd.f32 %v2166_v9, %v1160_v6  ;;  %v2207_v1 = vpop.f32.mrf.mxu1  ;;  %v1305_v16 = vmax.f32 %v1283_v31, 0.0 }
 0x142   : > { %v2168_v21 = vpop.f32.mrf.mxu0 }
 0x143   : > { %v1286_v24 = vadd.f32 %v2206_v10, %v1223_v20  ;;  %v2169_v26 = vadd.f32 %v2168_v21, %v2167_v18  ;;  %v2208_v27 = vpop.f32.mrf.mxu1  ;;  %v2397_v20 = vld [vmem:[%s3185_s5 + $0x64] ss:$8 sps:$4 sm:$0xff]   ;;  %v2400_v10 = vld [vmem:[%s3185_s5 + $0x54] ss:$8 sps:$4 sm:$0xff]   ;;  %v2401_v21 = vld [vmem:[%s3185_s5 + $0x40] ss:$8 sps:$4 sm:$0xff]  }
 0x144   : > { %v2170_v30 = vpop.f32.mrf.mxu0  ;;  %v2209_v34 = vadd.f32 %v2208_v27, %v2207_v1  ;;  %v2398_v1 = vld [vmem:[%s3185_s5 + $0x50] ss:$8 sps:$4 sm:$0xff]   ;;  %v2412_v27 = vld [vmem:[%s3185_s5 + $0x14] ss:$8 sps:$4 sm:$0xff]  }
 0x145   : > { %v1306_v32 = vmax.f32 %v1286_v24, 0.0  ;;  %v1228_v33 = vadd.f32 %v2169_v26, %v1165_v4  ;;  %v2210_v35 = vpop.f32.mrf.mxu1  ;;  %v2403_v4 = vld [vmem:[%s3185_s5 + $0x44] ss:$8 sps:$4 sm:$0xff]   ;;  %v2407_v26 = vld [vmem:[%s3185_s5 + $0x20] ss:$8 sps:$4 sm:$0xff]  }
 0x146   : > { %v2171_v36 = vpop.f32.mrf.mxu0  ;;  %v2409_v24 = vld [vmem:[%s3185_s5 + $0x24] ss:$8 sps:$4 sm:$0xff]  }
 0x147   : > { %v1291_v39 = vadd.f32 %v2209_v34, %v1228_v33  ;;  %v2172_v40 = vadd.f32 %v2171_v36, %v2170_v30  ;;  %v2211_v41 = vpop.f32.mrf.mxu1  ;;  %v2285_v14 = vpack.i.bf16 %v1306_v32, %v1304_v29  ;;  %v2415_v29 = vld [vmem:[%s3185_s5 + $0x4] ss:$8 sps:$4 sm:$0xff]   ;;  %v2413_v30 = vld [vmem:[%s3185_s5] ss:$8 sps:$4 sm:$0xff]  }
 0x148   : > { %v2212_v44 = vadd.f32 %v2211_v41, %v2210_v35  ;;  %v2173_v49 = vpop.f32.mrf.mxu0  ;;  %v2007_v33 = vld [vmem:[%s3184_s4] ss:$0 sm:$0xff] }
 0x149   : > { %v1307_v42 = vmax.f32 %v1291_v39, 0.0  ;;  %v1231_v43 = vadd.f32 %v2172_v40, %v1168_v37  ;;  %2286 = vrot.lane.b32.xlu0 %v2285_v14, %s2479_s19  ;;  %v1688_v49 = vlaneseq }
 0x14a   : > { %v2174_v50 = vpop.f32.mrf.mxu0 }
 0x14b   : > { %v1294_v45 = vadd.f32 %v2212_v44, %v1231_v43  ;;  %v2290_v46 = vpack.i.bf16 %v1307_v42, %v1305_v16  ;;  %v1689_v50 = vshrl.u32 %v1688_v49, 7 }
 0x14c   : > { %v2176_v51 = vpop.f32.mrf.mxu0 }
 0x14d   : > { %v1308_v47 = vmax.f32 %v1294_v45, 0.0  ;;  %2291 = vrot.lane.b32.xlu0 %v2290_v46, %s2480_s20  ;;  %v1690_v51 = vsub.s32 0, %v1689_v50  ;;  %s1910_s20 = sshll.u32 %s2721_s9, 4 }
 0x14e   : > { %v2177_v53 = vpop.f32.mrf.mxu0  ;;  %s435_s22 = scalar_lea.vmem [#allocation3], %s1910_s20 }
 0x14f   : > { %v2295_v48 = vpack.i.bf16 %v1308_v47, %v1306_v32  ;;  %v1686_v53 = vld [vmem:[%s3186_s6] sm:$0x3]  ;;  %s1838_s17 = sshll.u32 %s435_s22, 4  ;;  %s1839_s17 = int_to_ptr.vmem [resolvable:$true] %s1838_s17 }
 0x150   : > { %s2416_s14 = scalar_lea.vmem %s1839_s17, 256 }
 0x151   : > { %2296 = vrot.lane.b32.xlu1 %v2295_v48, %s2481_s21  ;;  %s2058_s21 = sshll.u32 %s1902_s28, 8  ;;  %p2417_p13 = scmp.ne.s32.totalorder %s1839_s17, %s2416_s14 }
 0x152   : > { %s3143_s8 = scalar_lea.hbm %s3187_s7, %s2058_s21  ;;  %s2483_s28 = smov [#allocation3]  }
 0x153   : > { %p2418_p0 = pnand %p2417_p13, %p2562_p6  ;;  %s2420_s15 = sshll.u32 %s2483_s28, 4  ;;  %s2421_s15 = int_to_ptr.vmem [resolvable:$false] %s2420_s15 }
 0x154   : > { %p2423_p2 = scmp.lt.s32.totalorder %s1839_s17, %s2421_s15 }
 0x155   : > { %p2419_p1 = pneg %p2418_p0 }
 0x1bb   : > { %v2287_v54 = vpop.permute.xlu0 %2286 }
 0x1bc   : > { %v2289_v55 = vunpack.i.h.bf16 %v2287_v54  ;;  %v2288_v56 = vunpack.i.l.bf16 %v2287_v54  ;;  %v1694_v54 = vsub.s32 1, %v1689_v50 }
 0x1be   : > { %v1334_v61 = vsel %vm1332_vm0, %v1305_v16, %v2289_v55  ;;  %v1333_v62 = vsel %vm1332_vm0, %v1303_v57, %v2288_v56 }
 0x1bf   : > { %v2292_v58 = vpop.permute.xlu0 %2291  ;;  %v1341_v5 = vpack.c.bf16 %v1334_v61, %v1333_v62 }
 0x1c0   : > { %v2294_v59 = vunpack.i.h.bf16 %v2292_v58  ;;  %v2293_v60 = vunpack.i.l.bf16 %v2292_v58 }
 0x1c2   : > { %v1336_v63 = vsel %vm1335_vm1, %v2288_v56, %v2293_v60  ;;  %v1337_v2 = vsel %vm1335_vm1, %v2289_v55, %v2294_v59  ;;  %v1691_v55 = vrot.slane %v1686_v53, %v1690_v51  ;;  %v1695_v56 = vrot.slane %v1686_v53, %v1694_v54 }
 0x1c3   : > { %v2297_v0 = vpop.permute.xlu1 %2296  ;;  %v1342_v3 = vpack.c.bf16 %v1337_v2, %v1336_v63 }
 0x1c4   : > { %v2299_v6 = vunpack.i.h.bf16 %v2297_v0  ;;  %v2298_v8 = vunpack.i.l.bf16 %v2297_v0 }
 0x1c5   : > { %1612 = vmatprep.mubr.bf16.mxu0 %v1342_v3 }
 0x1c6   : > { %v1339_v9 = vsel %vm1338_vm2, %v2293_v60, %v2298_v8  ;;  %v1340_v11 = vsel %vm1338_vm2, %v2294_v59, %v2299_v6  ;;  %v1344_v12 = vpack.c.bf16 %v2299_v6, %v2298_v8  ;;  %1613 = vmatmul.mubr.bf16.vlgmr.msra.gmra.mxu0 %v1341_v5 }
 0x1c7   : > { %v1343_v38 = vpack.c.bf16 %v1340_v11, %v1339_v9  ;;  %1810 = vmatprep.mubr.bf16.mxu0 %v2478_v25  ;;  %1779 = vmatpush1.bf16.msra.mxu0 %v2392_v13  ;;  %v2395_v25 = vld [vmem:[%s3185_s5 + $0x60] ss:$8 sps:$4 sm:$0xff]  }
 0x1c8   : > { %2036 = vmatprep.mubr.msk.bf16.mxu1 %vm1576_vm3, %v1344_v12  ;;  %1780 = vmatprep.subr.bf16.mxu0 %v2397_v20 }
 0x1c9   : > { %1654 = vmatmul.mubr.bf16.vlgmr.msra.gmra.mxu1 %v1343_v38 }
 0x1cb   : > { %1781 = vmatpush1.bf16.msra.mxu0 %v2395_v25 }
 0x1cc   : > { %1782 = vmatprep.subr.bf16.mxu0 %v2400_v10 }
 0x1cf   : > { %1783 = vmatpush1.bf16.msra.mxu0 %v2398_v1 }
 0x1d0   : > { %1784 = vmatprep.subr.bf16.mxu0 %v2403_v4 }
 0x1d3   : > { %1785 = vmatpush1.bf16.msra.mxu0 %v2401_v21 }
 0x1d4   : > { %1786 = vmatprep.subr.bf16.mxu0 %v2406_v22 }
 0x1d7   : > { %1787 = vmatpush1.bf16.msra.mxu0 %v2404_v23 }
 0x1d8   : > { %1788 = vmatprep.subr.bf16.mxu0 %v2409_v24 }
 0x1da   : > { %v2213_v17 = vpop.f32.mrf.mxu1 }
 0x1db   : > { %1789 = vmatpush1.bf16.msra.mxu0 %v2407_v26 }
 0x1dc   : > { %v2214_v18 = vpop.f32.mrf.mxu1  ;;  %1790 = vmatprep.subr.bf16.mxu0 %v2412_v27 }
 0x1de   : > { %v2216_v19 = vpop.f32.mrf.mxu1 }
 0x1df   : > { %1791 = vmatpush1.bf16.msra.mxu0 %v2410_v28 }
 0x1e0   : > { %v2217_v7 = vpop.f32.mrf.mxu1  ;;  %1792 = vmatprep.subr.bf16.mxu0 %v2415_v29 }
 0x1e3   : > { %1793 = vmatpush1.bf16.msra.mxu0 %v2413_v30 }
 0x286   : > { %v2235_v31 = vpop.f32.mrf.mxu0 }
 0x288   : > { %v2236_v32 = vpop.f32.mrf.mxu0 }
 0x289   : > { %v2237_v34 = vadd.f32 %v2236_v32, %v2235_v31  ;;  %v1655_v35 = vpop.f32.mrf.mxu1 }
 0x28a   : > { %v2238_v52 = vpop.f32.mrf.mxu0 }
 0x28b   : > { %v1615_v36 = vadd.f32 %v2237_v34, %v2007_v33  ;;  %v1657_v37 = vpop.f32.mrf.mxu1 }
 0x28c   : > { %v2239_v39 = vpop.f32.mrf.mxu0 }
 0x28d   : > { %v1656_v40 = vadd.f32 %v1655_v35, %v1615_v36  ;;  %v2240_v41 = vadd.f32 %v2239_v39, %v2238_v52  ;;  %v1658_v14 = vpop.f32.mrf.mxu1 }
 0x28f   : > { %v1618_v16 = vadd.f32 %v2240_v41, %v2007_v33  ;;  %v1660_v42 = vpop.f32.mrf.mxu1  ;;  %v1662_v45 = vmax.f32 %v1656_v40, 0.0 }
 0x291   : > { %v1659_v43 = vadd.f32 %v1658_v14, %v1618_v16 }
 0x293   : > { %v1663_v44 = vmax.f32 %v1659_v43, 0.0 }
 0x295   : > { %1665 = vrot.lane.b32.xlu1 %v1663_v44, %s2482_s16  ;;  %s2422_s16 = scalar_lea.vmem %s2421_s15, 512 }
 0x296   : > { %p2424_p3 = scmp.lt.s32.totalorder %s2422_s16, %s2416_s14 }
 0x298   : > { %p2425_p4 = por %p2424_p3, %p2423_p2 }
 0x29a   : > { %p2426_p5 = pnand %p2425_p4, %p2419_p1 }
 0x307   : > { %v1666_v46 = vpop.permute.xlu1 %1665 }
 0x308   : > { %v1668_v47 = vsel %vm1576_vm3, %v1662_v45, %v1666_v46 }
 0x309   : > { %v1669_v48 = vpack.c.bf16 %v1668_v47, %v1668_v47 }
 0x30b   : > { %1811 = vmatmul.mubr.bf16.vlgmr.msra.gmra.mxu0 %v1669_v48 }
 0x3cb   : > { %v1812_v57 = vpop.f32.mrf.mxu0 }
 0x3cc   : > { %v1813_v58 = vadd.f32 %v1812_v57, %v1691_v55 }
 0x3cd   : > { %v1814_v59 = vpop.f32.mrf.mxu0 }
 0x3ce   : > { %v1819_v60 = vmax.f32 %v1813_v58, 0.0  ;;  %v1815_v61 = vadd.f32 %v1814_v59, %v1695_v56 }
 0x3cf   : > { %v1816_v62 = vpop.f32.mrf.mxu0 }
 0x3d0   : > { %1821 = vst [vmem:[%s435_s22] sm:$0xff] %v1819_v60  ;;  %v1820_v63 = vmax.f32 %v1815_v61, 0.0 }
 0x3d1   : > { %v1817_v2 = vpop.f32.mrf.mxu0 }
 0x3d2   : > { %1822 = vst [vmem:[%s435_s22 + $0x8] sm:$0xff] %v1820_v63 }
 0x3d3   : > { %2429 = shalt.err (!%p2426_p5)
}
 0x3d4   : > { %s2430_s18 = scalar_lea.hbm %s3143_s8, 256  ;;  %s2434_s20 = scalar_lea.hbm %s3187_s7, 512 }
 0x3d5   : > { %p2431_p7 = scmp.ne.s32.totalorder %s3143_s8, %s2430_s18  ;;  %p2435_p12 = scmp.lt.s32.totalorder %s3143_s8, %s3187_s7 }
 0x3d6   : > { %p2436_p13 = scmp.lt.s32.totalorder %s2434_s20, %s2430_s18 }
 0x3d7   : > { %p2432_p10 = pnand %p2431_p7, %p2562_p6 }
 0x3d8   : > { %p2437_p0 = por %p2436_p13, %p2435_p12 }
 0x3d9   : > { %p2433_p11 = pneg %p2432_p10 }
 0x3db   : > { %p2438_p1 = pnand %p2437_p0, %p2433_p11 }
 0x3dd   : > { %2441 = shalt.err (!%p2438_p1)
}
 0x3de   : > { %2241 = dma.vmem_to_hbm [thread:$0]  (%p2562_p6), %s1839_s17, 256, %s3143_s8, %s1824_s13  }
 0x3df PF: > { %s1850_s23 = sand.u32 1, %s2464_s24   ;;  %p2244_p2 = pnand %p1905_p9, %p2566_p8 }
 0x3e0   : > { %s1851_s29 = scalar_lea.sflag [#allocation4], %s1850_s23 }
 0x3e1   : > { %p2245_p3 = pneg %p2244_p2 }
 0x3e3   : > { %2459 = dma.done.wait (%p2245_p3), %s1851_s29, 256  }
 0x3e4   : > { %2461 = vsyncadd (%p2245_p3), %s1851_s29, 4294967040  ;;  %p17_p4 = scmp.ge.s32.totalorder %s2547_s30, 4   ;;  %s3190_s24 = smov %s2468_s25 }
 0x3e5   : > { %s3191_s25 = smov %s2472_s26  ;;  %s3192_s26 = smov %s2560_s10 }
 0x3e6   : > { %s3193_s27 = smov %s2547_s30  ;;  %19 = sbr.rel (!%p17_p4) target bundleno = 3 (0x3), region = 157 }
 0x3eb   :  { %1856 = vsyncpa [#allocation4], 1 }
 0x3ec   :  { %1858 = vsyncpa [#allocation4 + $0x1], 1 }

</bundles_post_ra>
